<compile_context>
chip_gen: v6e
topology: v6e:2x2x1
jax: 0.10.0
libtpu: 0.0.40
codegen_flags: <defaults>
</compile_context>

<pallas_src>
import math
import functools

import jax
import jax.numpy as jnp
from jax.experimental import pallas as pl
from jax.experimental.pallas import tpu as pltpu


def _silu(x):
    return x * jax.nn.sigmoid(x)


def mamba_block_kernel(
    x_ref,        # (l, d_model)              one batch element (batch dim squeezed)
    w_in_ref,     # (d_model, 2*d_inner)      fused in_proj weight
    conv_w_ref,   # (d_conv, d_inner)         depthwise conv weights (tap, channel)
    conv_b_ref,   # (1, d_inner)
    w_x_ref,      # (d_inner, 128)            [w_x_dt@w_dt | w_x_B | w_x_C | zero pad]
    b_dt_ref,     # (1, d_inner)
    a_pack_ref,   # (8, n_fold*d_inner)       packed -exp(A_log): [s, j*d_in+d] = A[d, j*8+s]
    d_ref,        # (1, d_inner)
    w_out_ref,    # (d_inner, d_model)
    o_ref,        # (l, d_model)
    *, l, d_conv, d_inner, d_state, mxu_dtype):
    n_fold = d_state // 8
    lanes = n_fold * d_inner                       # 128 at d_inner=64, d_state=16

    x = x_ref[...]                                 # (l, d_model)

    # ---- fused in_proj: one (l, 2*d_inner) matmul ----
    xr = jnp.dot(x.astype(mxu_dtype), w_in_ref[...].astype(mxu_dtype),
                 preferred_element_type=jnp.float32)          # (l, 2*d_inner) f32
    xin = xr[:, :d_inner]                          # (l, d_inner)
    res = xr[:, d_inner:]                          # (l, d_inner)

    # ---- depthwise causal conv1d, fully in-register (no VMEM scratch) ----
    conv_w = conv_w_ref[...]                       # hoisted single load (d_conv, d_inner)
    acc = conv_b_ref[...] + xin * conv_w[d_conv - 1:d_conv, :]   # current-time tap
    for k in range(d_conv - 1):                    # static unroll, 3 shifted taps
        shift = d_conv - 1 - k
        shifted = jnp.concatenate(
            [jnp.zeros((shift, d_inner), jnp.float32), xin[:l - shift, :]], axis=0)
        acc = acc + shifted * conv_w[k:k + 1, :]
    xc = _silu(acc)                                # (l, d_inner)   u

    # ---- fused x_proj (+ folded dt_proj), 128-lane-dense result ----
    xdbc = jnp.dot(xc.astype(mxu_dtype), w_x_ref[...].astype(mxu_dtype),
                   preferred_element_type=jnp.float32)        # (l, 128)
    delta = jax.nn.softplus(xdbc[:, :d_inner] + b_dt_ref[...])           # (l, d_inner)
    Bmat = xdbc[:, d_inner:d_inner + d_state]                            # (l, n)
    Cmat = xdbc[:, d_inner + d_state:d_inner + 2 * d_state]              # (l, n)

    # ---- off-chain scan operand prep, all in the packed (8, lanes) layout ----
    du = delta * xc                                                      # (l, d_inner)
    delta_t = jnp.concatenate([delta] * n_fold, axis=1)                  # (l, lanes)
    # one EUP burst for the whole window: dA[t, s, j*d_in+d] = exp(delta[t,d]*A[d, j*8+s])
    dA = jnp.exp(delta_t[:, None, :] * a_pack_ref[...][None, :, :])      # (l, 8, lanes)

    B_T = Bmat.T                                                         # (n, l) tiny
    C_T = Cmat.T                                                         # (n, l) tiny

    def fold_n(m):   # (d_state, d_inner) -> (8, lanes): n = j*8 + sublane
        return jnp.concatenate([m[j * 8:(j + 1) * 8, :] for j in range(n_fold)], axis=1)

    # dBu hoisted off the serial chain (one packed vreg per step)
    dbu_list = [fold_n(B_T[:, t:t + 1] * du[t:t + 1, :]) for t in range(l)]
    c_list = [fold_n(jnp.broadcast_to(C_T[:, t:t + 1], (d_state, d_inner)))
              for t in range(l)]

    # ---- serial recurrence: exactly 1 vmul + 1 vadd on a single vreg per step ----
    # TODO(synk): at production seq_len replace this static unroll with lax.fori_loop
    # and keep the running state in VMEM scratch.
    state = jnp.zeros((8, lanes), jnp.float32)
    states = []
    for t in range(l):
        state = dA[t] * state + dbu_list[t]
        states.append(state)

    # ---- C contraction after the loop: one batched multiply + sublane reduce ----
    S = jnp.stack(states, axis=0)                  # (l, 8, lanes)
    Cp = jnp.stack(c_list, axis=0)                 # (l, 8, lanes)
    r = jnp.sum(S * Cp, axis=1)                    # (l, lanes)  cross-sublane reduce
    y = r[:, :d_inner]
    for j in range(1, n_fold):                     # fold the lane halves (n groups)
        y = y + r[:, j * d_inner:(j + 1) * d_inner]

    # ---- skip (u*D), gate, out_proj, direct store (no output-slab relayout) ----
    y = y + xc * d_ref[...]
    y = y * _silu(res)
    o = jnp.dot(y.astype(mxu_dtype), w_out_ref[...].astype(mxu_dtype),
                preferred_element_type=jnp.float32)            # (l, d_model)
    o_ref[...] = o.astype(o_ref.dtype)


def mamba_block_pallas(x, p, *, d_conv, mxu_dtype=jnp.float32):
    b, l, d_model = x.shape
    d_inner = p['w_in'].shape[1] // 2
    d_state = p['a_log'].shape[1]
    assert p['conv_w'].shape[0] == d_conv, "conv_w tap count must equal d_conv"
    assert d_state % 8 == 0, "packed scan layout folds d_state over 8 sublanes"

    hp = jax.lax.Precision.HIGHEST
    # TODO(synk): at production d_inner keep the two-stage low-rank dt path
    # (dt_rank padded to 128) instead of densifying to a d_inner x d_inner weight.
    w_delta = jnp.dot(p['w_x_dt'], p['w_dt'], precision=hp)       # (d_inner, d_inner)
    w_x_fused = jnp.concatenate([w_delta, p['w_x_b'], p['w_x_c']], axis=1)
    pad = (-w_x_fused.shape[1]) % 128
    if pad:                                                       # 96 -> 128 lane-dense
        w_x_fused = jnp.pad(w_x_fused, ((0, 0), (0, pad)))

    # A packed once in the wrapper: a_pack[s, j*d_inner + d] = -exp(A_log)[d, j*8 + s]
    n_fold = d_state // 8
    a_pack = ((-jnp.exp(p['a_log'])).T
              .reshape(n_fold, 8, d_inner)
              .transpose(1, 0, 2)
              .reshape(8, n_fold * d_inner))

    inputs = [x, p['w_in'], p['conv_w'], p['conv_b'], w_x_fused,
              p['b_dt'], a_pack, p['d'], p['w_out']]

    def full_spec(a):
        nd = a.ndim
        return pl.BlockSpec(a.shape, lambda i: (0,) * nd)         # grid-invariant weight

    kernel = functools.partial(mamba_block_kernel, l=l, d_conv=d_conv,
                               d_inner=d_inner, d_state=d_state, mxu_dtype=mxu_dtype)

    # Grid over batch, "parallel": v7x splits the batch across its two TensorCores;
    # on single-TC v5e/v6e it is a cheap sequential loop (weights not re-fetched).
    out = pl.pallas_call(
        kernel,
        out_shape=jax.ShapeDtypeStruct((b, l, d_model), jnp.float32),
        grid_spec=pltpu.PrefetchScalarGridSpec(
            num_scalar_prefetch=0,
            grid=(b,),
            in_specs=[pl.BlockSpec((None, l, d_model), lambda i: (i, 0, 0))]
                     + [full_spec(a) for a in inputs[1:]],
            out_specs=pl.BlockSpec((None, l, d_model), lambda i: (i, 0, 0))),
        compiler_params=pltpu.CompilerParams(
            dimension_semantics=("parallel",)),
    )(*inputs)
    return out


def init_params(key, d_model, d_state, expand, dt_rank, d_conv,
                dt_min=0.001, dt_max=0.1, dt_scale=1.0, dt_init_floor=1e-4):
    """Deterministic synthetic init mirroring MambaBlock.__init__ shapes/semantics."""
    d_inner = int(expand * d_model)
    ks = jax.random.split(key, 7)

    def unif(k, shape, bound):
        return jax.random.uniform(k, shape, jnp.float32, -bound, bound)

    # Linear weights stored pre-transposed so the kernel computes x @ W.
    w_in = unif(ks[0], (d_model, 2 * d_inner), 1.0 / math.sqrt(d_model))
    conv_w = unif(ks[1], (d_conv, d_inner), 1.0 / math.sqrt(d_conv))   # (tap, channel)
    conv_b = unif(ks[2], (1, d_inner), 1.0 / math.sqrt(d_conv))
    w_x = unif(ks[3], (d_inner, dt_rank + 2 * d_state), 1.0 / math.sqrt(d_inner))

    dt_init_std = dt_rank ** (-0.5) * dt_scale
    w_dt = unif(ks[4], (dt_rank, d_inner), dt_init_std)
    dt = jnp.exp(jax.random.uniform(ks[5], (d_inner,), jnp.float32)
                 * (math.log(dt_max) - math.log(dt_min)) + math.log(dt_min))
    dt = jnp.maximum(dt, dt_init_floor)
    b_dt = (dt + jnp.log(-jnp.expm1(-dt))).reshape(1, d_inner)

    a_log = jnp.log(jnp.broadcast_to(
        jnp.arange(1, d_state + 1, dtype=jnp.float32), (d_inner, d_state)))
    d_param = jnp.ones((1, d_inner), jnp.float32)
    w_out = unif(ks[6], (d_inner, d_model), 1.0 / math.sqrt(d_inner))

    return dict(
        w_in=w_in, conv_w=conv_w, conv_b=conv_b,
        w_x_dt=w_x[:, :dt_rank],
        w_x_b=w_x[:, dt_rank:dt_rank + d_state],
        w_x_c=w_x[:, dt_rank + d_state:],
        w_dt=w_dt, b_dt=b_dt, a_log=a_log, d=d_param, w_out=w_out)


def mamba_block_ref(x, p, *, d_conv):
    """Pure-JAX reference (mirrors the PyTorch forward, unfused) for verification."""
    hp = jax.lax.Precision.HIGHEST
    d_inner = p['w_in'].shape[1] // 2
    xz = jnp.einsum('bld,de->ble', x, p['w_in'], precision=hp)
    xin, res = xz[..., :d_inner], xz[..., d_inner:]
    b, l, _ = xin.shape
    xpad = jnp.pad(xin, ((0, 0), (d_conv - 1, 0), (0, 0)))
    acc = jnp.broadcast_to(p['conv_b'][None], (b, l, d_inner))
    for k in range(d_conv):
        acc = acc + p['conv_w'][k][None, None, :] * xpad[:, k:k + l, :]
    xc = jax.nn.silu(acc)

    delta_r = jnp.einsum('bld,dr->blr', xc, p['w_x_dt'], precision=hp)
    B = jnp.einsum('bld,dn->bln', xc, p['w_x_b'], precision=hp)
    C = jnp.einsum('bld,dn->bln', xc, p['w_x_c'], precision=hp)
    delta = jax.nn.softplus(
        jnp.einsum('blr,rd->bld', delta_r, p['w_dt'], precision=hp) + p['b_dt'][None])

    A = -jnp.exp(p['a_log'])
    dA = jnp.exp(jnp.einsum('bld,dn->bldn', delta, A))
    dBu = delta[..., None] * B[:, :, None, :] * xc[..., None]
    s = jnp.zeros((b, d_inner, A.shape[1]), jnp.float32)
    ys = []
    for t in range(l):
        s = dA[:, t] * s + dBu[:, t]
        ys.append(jnp.einsum('bdn,bn->bd', s, C[:, t]))
    y = jnp.stack(ys, axis=1)
    y = y + xc * p['d'][None]
    y = y * jax.nn.silu(res)
    return jnp.einsum('bld,de->ble', y, p['w_out'], precision=hp)


if __name__ == "__main__":
    # ModelArgs(d_model=32) -> d_inner=64, d_state=16, dt_rank=2, d_conv=4
    d_model, d_state, expand, d_conv = 32, 16, 2, 4
    dt_rank = math.ceil(d_model / 16)
    batch, seq = 2, 8

    key = jax.random.PRNGKey(0)
    kx, kp = jax.random.split(key)
    x = jax.random.normal(kx, (batch, seq, d_model), jnp.float32)
    params = init_params(kp, d_model, d_state, expand, dt_rank, d_conv)

    # mxu_dtype=jnp.float32 at toy sizes to keep the 5e-3 tolerance;
    # production v6e/v7x: mxu_dtype=jnp.bfloat16 (elementwise path stays f32).
    out = mamba_block_pallas(x, params, d_conv=d_conv, mxu_dtype=jnp.float32)
    out = jax.block_until_ready(out)

    ref = jax.block_until_ready(mamba_block_ref(x, params, d_conv=d_conv))
    assert out.shape == (batch, seq, d_model)
    assert jnp.all(jnp.isfinite(out))
    assert jnp.allclose(out, ref, rtol=5e-3, atol=5e-3), "mismatch vs. JAX reference"

    print("KERNEL_OK")
</pallas_src>

<mosaic_0001>
module attributes {stable_mosaic.version = 11 : i64} {
  func.func @mamba_block_kernel(%arg0: i32, %arg1: memref<1x8x32xf32, #tpu.memory_space<vmem>>, %arg2: memref<32x128xf32, #tpu.memory_space<vmem>>, %arg3: memref<4x64xf32, #tpu.memory_space<vmem>>, %arg4: memref<1x64xf32, #tpu.memory_space<vmem>>, %arg5: memref<64x128xf32, #tpu.memory_space<vmem>>, %arg6: memref<1x64xf32, #tpu.memory_space<vmem>>, %arg7: memref<8x128xf32, #tpu.memory_space<vmem>>, %arg8: memref<1x64xf32, #tpu.memory_space<vmem>>, %arg9: memref<64x32xf32, #tpu.memory_space<vmem>>, %arg10: memref<1x8x32xf32, #tpu.memory_space<vmem>>) attributes {dimension_semantics = [#tpu.dimension_semantics<parallel>], iteration_bounds = array<i64: 2>, scalar_prefetch = 0 : i64, scratch_operands = 0 : i64, tpu.core_type = #tpu.core_type<tc>, window_params = [{transform_indices = @transform_0, window_bounds = array<i64: 1, 8, 32>}, {pipeline_mode = #tpu.pipeline_mode<synchronous>, transform_indices = @transform_1, window_bounds = array<i64: 32, 128>}, {pipeline_mode = #tpu.pipeline_mode<synchronous>, transform_indices = @transform_2, window_bounds = array<i64: 4, 64>}, {pipeline_mode = #tpu.pipeline_mode<synchronous>, transform_indices = @transform_3, window_bounds = array<i64: 1, 64>}, {pipeline_mode = #tpu.pipeline_mode<synchronous>, transform_indices = @transform_4, window_bounds = array<i64: 64, 128>}, {pipeline_mode = #tpu.pipeline_mode<synchronous>, transform_indices = @transform_5, window_bounds = array<i64: 1, 64>}, {pipeline_mode = #tpu.pipeline_mode<synchronous>, transform_indices = @transform_6, window_bounds = array<i64: 8, 128>}, {pipeline_mode = #tpu.pipeline_mode<synchronous>, transform_indices = @transform_7, window_bounds = array<i64: 1, 64>}, {pipeline_mode = #tpu.pipeline_mode<synchronous>, transform_indices = @transform_8, window_bounds = array<i64: 64, 32>}, {transform_indices = @transform_9, window_bounds = array<i64: 1, 8, 32>}]} {
    %c0 = arith.constant 0 : index
    %c0_0 = arith.constant 0 : index
    %c0_1 = arith.constant 0 : index
    %0 = vector.load %arg1[%c0, %c0_0, %c0_1] : memref<1x8x32xf32, #tpu.memory_space<vmem>>, vector<1x8x32xf32>
    %1 = vector.shape_cast %0 : vector<1x8x32xf32> to vector<8x32xf32>
    %c0_2 = arith.constant 0 : index
    %c0_3 = arith.constant 0 : index
    %2 = vector.load %arg2[%c0_2, %c0_3] : memref<32x128xf32, #tpu.memory_space<vmem>>, vector<32x128xf32>
    %cst = arith.constant dense<0.000000e+00> : vector<8x128xf32>
    %3 = tpu.matmul %1, %2, %cst {dimension_numbers = #tpu.dot_dimension_numbers<[1], [0], [0], [1], [0, 0, 1, 1], [], []>} : vector<8x32xf32>, vector<32x128xf32>, vector<8x128xf32> -> vector<8x128xf32>
    %4 = vector.extract_strided_slice %3 {offsets = [0, 0], sizes = [8, 64], strides = [1, 1]} : vector<8x128xf32> to vector<8x64xf32>
    %5 = vector.extract_strided_slice %3 {offsets = [0, 64], sizes = [8, 64], strides = [1, 1]} : vector<8x128xf32> to vector<8x64xf32>
    %c0_4 = arith.constant 0 : index
    %c0_5 = arith.constant 0 : index
    %6 = vector.load %arg3[%c0_4, %c0_5] : memref<4x64xf32, #tpu.memory_space<vmem>>, vector<4x64xf32>
    %c0_6 = arith.constant 0 : index
    %c0_7 = arith.constant 0 : index
    %7 = vector.load %arg4[%c0_6, %c0_7] : memref<1x64xf32, #tpu.memory_space<vmem>>, vector<1x64xf32>
    %8 = vector.extract_strided_slice %6 {offsets = [3, 0], sizes = [1, 64], strides = [1, 1]} : vector<4x64xf32> to vector<1x64xf32>
    %9 = vector.broadcast %8 : vector<1x64xf32> to vector<8x64xf32>
    %10 = arith.mulf %4, %9 : vector<8x64xf32>
    %11 = vector.broadcast %7 : vector<1x64xf32> to vector<8x64xf32>
    %12 = arith.addf %11, %10 : vector<8x64xf32>
    %cst_8 = arith.constant 0.000000e+00 : f32
    %13 = vector.broadcast %cst_8 : f32 to vector<3x64xf32>
    %14 = vector.extract_strided_slice %4 {offsets = [0, 0], sizes = [5, 64], strides = [1, 1]} : vector<8x64xf32> to vector<5x64xf32>
    %15 = tpu.concatenate %13, %14 in 0 : vector<3x64xf32>, vector<5x64xf32> -> vector<8x64xf32>
    %16 = vector.extract_strided_slice %6 {offsets = [0, 0], sizes = [1, 64], strides = [1, 1]} : vector<4x64xf32> to vector<1x64xf32>
    %17 = vector.broadcast %16 : vector<1x64xf32> to vector<8x64xf32>
    %18 = arith.mulf %15, %17 : vector<8x64xf32>
    %19 = arith.addf %12, %18 : vector<8x64xf32>
    %cst_9 = arith.constant 0.000000e+00 : f32
    %20 = vector.broadcast %cst_9 : f32 to vector<2x64xf32>
    %21 = vector.extract_strided_slice %4 {offsets = [0, 0], sizes = [6, 64], strides = [1, 1]} : vector<8x64xf32> to vector<6x64xf32>
    %22 = tpu.concatenate %20, %21 in 0 : vector<2x64xf32>, vector<6x64xf32> -> vector<8x64xf32>
    %23 = vector.extract_strided_slice %6 {offsets = [1, 0], sizes = [1, 64], strides = [1, 1]} : vector<4x64xf32> to vector<1x64xf32>
    %24 = vector.broadcast %23 : vector<1x64xf32> to vector<8x64xf32>
    %25 = arith.mulf %22, %24 : vector<8x64xf32>
    %26 = arith.addf %19, %25 : vector<8x64xf32>
    %cst_10 = arith.constant 0.000000e+00 : f32
    %27 = vector.broadcast %cst_10 : f32 to vector<1x64xf32>
    %28 = vector.extract_strided_slice %4 {offsets = [0, 0], sizes = [7, 64], strides = [1, 1]} : vector<8x64xf32> to vector<7x64xf32>
    %29 = tpu.concatenate %27, %28 in 0 : vector<1x64xf32>, vector<7x64xf32> -> vector<8x64xf32>
    %30 = vector.extract_strided_slice %6 {offsets = [2, 0], sizes = [1, 64], strides = [1, 1]} : vector<4x64xf32> to vector<1x64xf32>
    %31 = vector.broadcast %30 : vector<1x64xf32> to vector<8x64xf32>
    %32 = arith.mulf %29, %31 : vector<8x64xf32>
    %33 = arith.addf %26, %32 : vector<8x64xf32>
    %34 = arith.negf %33 : vector<8x64xf32>
    %35 = math.exp %34 : vector<8x64xf32>
    %cst_11 = arith.constant 1.000000e+00 : f32
    %36 = vector.broadcast %cst_11 : f32 to vector<8x64xf32>
    %37 = arith.addf %36, %35 : vector<8x64xf32>
    %38 = arith.divf %36, %37 : vector<8x64xf32>
    %39 = arith.mulf %33, %38 : vector<8x64xf32>
    %c0_12 = arith.constant 0 : index
    %c0_13 = arith.constant 0 : index
    %40 = vector.load %arg5[%c0_12, %c0_13] : memref<64x128xf32, #tpu.memory_space<vmem>>, vector<64x128xf32>
    %cst_14 = arith.constant dense<0.000000e+00> : vector<8x128xf32>
    %41 = tpu.matmul %39, %40, %cst_14 {dimension_numbers = #tpu.dot_dimension_numbers<[1], [0], [0], [1], [0, 0, 1, 1], [], []>} : vector<8x64xf32>, vector<64x128xf32>, vector<8x128xf32> -> vector<8x128xf32>
    %42 = vector.extract_strided_slice %41 {offsets = [0, 0], sizes = [8, 64], strides = [1, 1]} : vector<8x128xf32> to vector<8x64xf32>
    %c0_15 = arith.constant 0 : index
    %c0_16 = arith.constant 0 : index
    %43 = vector.load %arg6[%c0_15, %c0_16] : memref<1x64xf32, #tpu.memory_space<vmem>>, vector<1x64xf32>
    %44 = vector.broadcast %43 : vector<1x64xf32> to vector<8x64xf32>
    %45 = arith.addf %42, %44 : vector<8x64xf32>
    %cst_17 = arith.constant 0.000000e+00 : f32
    %46 = vector.broadcast %cst_17 : f32 to vector<8x64xf32>
    %47 = arith.maximumf %45, %46 : vector<8x64xf32>
    %48 = vector.broadcast %cst_17 : f32 to vector<8x64xf32>
    %49 = arith.subf %45, %48 : vector<8x64xf32>
    %50 = arith.cmpf one, %49, %49 : vector<8x64xf32>
    %51 = vector.broadcast %cst_17 : f32 to vector<8x64xf32>
    %52 = arith.addf %45, %51 : vector<8x64xf32>
    %53 = math.absf %49 : vector<8x64xf32>
    %cst_18 = arith.constant 0.000000e+00 : f32
    %54 = vector.broadcast %cst_18 : f32 to vector<8x64xf32>
    %55 = arith.subf %54, %53 : vector<8x64xf32>
    %56 = math.exp %55 : vector<8x64xf32>
    %57 = math.log1p %56 : vector<8x64xf32>
    %58 = arith.addf %47, %57 : vector<8x64xf32>
    %59 = arith.select %50, %52, %58 : vector<8x64xi1>, vector<8x64xf32>
    %60 = vector.extract_strided_slice %41 {offsets = [0, 64], sizes = [8, 16], strides = [1, 1]} : vector<8x128xf32> to vector<8x16xf32>
    %61 = vector.extract_strided_slice %41 {offsets = [0, 80], sizes = [8, 16], strides = [1, 1]} : vector<8x128xf32> to vector<8x16xf32>
    %62 = arith.mulf %59, %39 : vector<8x64xf32>
    %63 = tpu.concatenate %59, %59 in 1 : vector<8x64xf32>, vector<8x64xf32> -> vector<8x128xf32>
    %64 = vector.shape_cast %63 : vector<8x128xf32> to vector<8x1x128xf32>
    %c0_19 = arith.constant 0 : index
    %c0_20 = arith.constant 0 : index
    %65 = vector.load %arg7[%c0_19, %c0_20] : memref<8x128xf32, #tpu.memory_space<vmem>>, vector<8x128xf32>
    %66 = vector.shape_cast %65 : vector<8x128xf32> to vector<1x8x128xf32>
    %67 = vector.broadcast %64 : vector<8x1x128xf32> to vector<8x8x128xf32>
    %68 = vector.broadcast %66 : vector<1x8x128xf32> to vector<8x8x128xf32>
    %69 = arith.mulf %67, %68 : vector<8x8x128xf32>
    %70 = math.exp %69 : vector<8x8x128xf32>
    %71 = tpu.transpose %60, [1, 0] : vector<8x16xf32> -> vector<16x8xf32>
    %72 = tpu.transpose %61, [1, 0] : vector<8x16xf32> -> vector<16x8xf32>
    %73 = vector.extract_strided_slice %71 {offsets = [0, 0], sizes = [16, 1], strides = [1, 1]} : vector<16x8xf32> to vector<16x1xf32>
    %74 = vector.extract_strided_slice %62 {offsets = [0, 0], sizes = [1, 64], strides = [1, 1]} : vector<8x64xf32> to vector<1x64xf32>
    %75 = vector.broadcast %73 : vector<16x1xf32> to vector<16x64xf32>
    %76 = vector.broadcast %74 : vector<1x64xf32> to vector<16x64xf32>
    %77 = arith.mulf %75, %76 : vector<16x64xf32>
    %78 = vector.extract_strided_slice %77 {offsets = [0, 0], sizes = [8, 64], strides = [1, 1]} : vector<16x64xf32> to vector<8x64xf32>
    %79 = vector.extract_strided_slice %77 {offsets = [8, 0], sizes = [8, 64], strides = [1, 1]} : vector<16x64xf32> to vector<8x64xf32>
    %80 = tpu.concatenate %78, %79 in 1 : vector<8x64xf32>, vector<8x64xf32> -> vector<8x128xf32>
    %81 = vector.extract_strided_slice %71 {offsets = [0, 1], sizes = [16, 1], strides = [1, 1]} : vector<16x8xf32> to vector<16x1xf32>
    %82 = vector.extract_strided_slice %62 {offsets = [1, 0], sizes = [1, 64], strides = [1, 1]} : vector<8x64xf32> to vector<1x64xf32>
    %83 = vector.broadcast %81 : vector<16x1xf32> to vector<16x64xf32>
    %84 = vector.broadcast %82 : vector<1x64xf32> to vector<16x64xf32>
    %85 = arith.mulf %83, %84 : vector<16x64xf32>
    %86 = vector.extract_strided_slice %85 {offsets = [0, 0], sizes = [8, 64], strides = [1, 1]} : vector<16x64xf32> to vector<8x64xf32>
    %87 = vector.extract_strided_slice %85 {offsets = [8, 0], sizes = [8, 64], strides = [1, 1]} : vector<16x64xf32> to vector<8x64xf32>
    %88 = tpu.concatenate %86, %87 in 1 : vector<8x64xf32>, vector<8x64xf32> -> vector<8x128xf32>
    %89 = vector.extract_strided_slice %71 {offsets = [0, 2], sizes = [16, 1], strides = [1, 1]} : vector<16x8xf32> to vector<16x1xf32>
    %90 = vector.extract_strided_slice %62 {offsets = [2, 0], sizes = [1, 64], strides = [1, 1]} : vector<8x64xf32> to vector<1x64xf32>
    %91 = vector.broadcast %89 : vector<16x1xf32> to vector<16x64xf32>
    %92 = vector.broadcast %90 : vector<1x64xf32> to vector<16x64xf32>
    %93 = arith.mulf %91, %92 : vector<16x64xf32>
    %94 = vector.extract_strided_slice %93 {offsets = [0, 0], sizes = [8, 64], strides = [1, 1]} : vector<16x64xf32> to vector<8x64xf32>
    %95 = vector.extract_strided_slice %93 {offsets = [8, 0], sizes = [8, 64], strides = [1, 1]} : vector<16x64xf32> to vector<8x64xf32>
    %96 = tpu.concatenate %94, %95 in 1 : vector<8x64xf32>, vector<8x64xf32> -> vector<8x128xf32>
    %97 = vector.extract_strided_slice %71 {offsets = [0, 3], sizes = [16, 1], strides = [1, 1]} : vector<16x8xf32> to vector<16x1xf32>
    %98 = vector.extract_strided_slice %62 {offsets = [3, 0], sizes = [1, 64], strides = [1, 1]} : vector<8x64xf32> to vector<1x64xf32>
    %99 = vector.broadcast %97 : vector<16x1xf32> to vector<16x64xf32>
    %100 = vector.broadcast %98 : vector<1x64xf32> to vector<16x64xf32>
    %101 = arith.mulf %99, %100 : vector<16x64xf32>
    %102 = vector.extract_strided_slice %101 {offsets = [0, 0], sizes = [8, 64], strides = [1, 1]} : vector<16x64xf32> to vector<8x64xf32>
    %103 = vector.extract_strided_slice %101 {offsets = [8, 0], sizes = [8, 64], strides = [1, 1]} : vector<16x64xf32> to vector<8x64xf32>
    %104 = tpu.concatenate %102, %103 in 1 : vector<8x64xf32>, vector<8x64xf32> -> vector<8x128xf32>
    %105 = vector.extract_strided_slice %71 {offsets = [0, 4], sizes = [16, 1], strides = [1, 1]} : vector<16x8xf32> to vector<16x1xf32>
    %106 = vector.extract_strided_slice %62 {offsets = [4, 0], sizes = [1, 64], strides = [1, 1]} : vector<8x64xf32> to vector<1x64xf32>
    %107 = vector.broadcast %105 : vector<16x1xf32> to vector<16x64xf32>
    %108 = vector.broadcast %106 : vector<1x64xf32> to vector<16x64xf32>
    %109 = arith.mulf %107, %108 : vector<16x64xf32>
    %110 = vector.extract_strided_slice %109 {offsets = [0, 0], sizes = [8, 64], strides = [1, 1]} : vector<16x64xf32> to vector<8x64xf32>
    %111 = vector.extract_strided_slice %109 {offsets = [8, 0], sizes = [8, 64], strides = [1, 1]} : vector<16x64xf32> to vector<8x64xf32>
    %112 = tpu.concatenate %110, %111 in 1 : vector<8x64xf32>, vector<8x64xf32> -> vector<8x128xf32>
    %113 = vector.extract_strided_slice %71 {offsets = [0, 5], sizes = [16, 1], strides = [1, 1]} : vector<16x8xf32> to vector<16x1xf32>
    %114 = vector.extract_strided_slice %62 {offsets = [5, 0], sizes = [1, 64], strides = [1, 1]} : vector<8x64xf32> to vector<1x64xf32>
    %115 = vector.broadcast %113 : vector<16x1xf32> to vector<16x64xf32>
    %116 = vector.broadcast %114 : vector<1x64xf32> to vector<16x64xf32>
    %117 = arith.mulf %115, %116 : vector<16x64xf32>
    %118 = vector.extract_strided_slice %117 {offsets = [0, 0], sizes = [8, 64], strides = [1, 1]} : vector<16x64xf32> to vector<8x64xf32>
    %119 = vector.extract_strided_slice %117 {offsets = [8, 0], sizes = [8, 64], strides = [1, 1]} : vector<16x64xf32> to vector<8x64xf32>
    %120 = tpu.concatenate %118, %119 in 1 : vector<8x64xf32>, vector<8x64xf32> -> vector<8x128xf32>
    %121 = vector.extract_strided_slice %71 {offsets = [0, 6], sizes = [16, 1], strides = [1, 1]} : vector<16x8xf32> to vector<16x1xf32>
    %122 = vector.extract_strided_slice %62 {offsets = [6, 0], sizes = [1, 64], strides = [1, 1]} : vector<8x64xf32> to vector<1x64xf32>
    %123 = vector.broadcast %121 : vector<16x1xf32> to vector<16x64xf32>
    %124 = vector.broadcast %122 : vector<1x64xf32> to vector<16x64xf32>
    %125 = arith.mulf %123, %124 : vector<16x64xf32>
    %126 = vector.extract_strided_slice %125 {offsets = [0, 0], sizes = [8, 64], strides = [1, 1]} : vector<16x64xf32> to vector<8x64xf32>
    %127 = vector.extract_strided_slice %125 {offsets = [8, 0], sizes = [8, 64], strides = [1, 1]} : vector<16x64xf32> to vector<8x64xf32>
    %128 = tpu.concatenate %126, %127 in 1 : vector<8x64xf32>, vector<8x64xf32> -> vector<8x128xf32>
    %129 = vector.extract_strided_slice %71 {offsets = [0, 7], sizes = [16, 1], strides = [1, 1]} : vector<16x8xf32> to vector<16x1xf32>
    %130 = vector.extract_strided_slice %62 {offsets = [7, 0], sizes = [1, 64], strides = [1, 1]} : vector<8x64xf32> to vector<1x64xf32>
    %131 = vector.broadcast %129 : vector<16x1xf32> to vector<16x64xf32>
    %132 = vector.broadcast %130 : vector<1x64xf32> to vector<16x64xf32>
    %133 = arith.mulf %131, %132 : vector<16x64xf32>
    %134 = vector.extract_strided_slice %133 {offsets = [0, 0], sizes = [8, 64], strides = [1, 1]} : vector<16x64xf32> to vector<8x64xf32>
    %135 = vector.extract_strided_slice %133 {offsets = [8, 0], sizes = [8, 64], strides = [1, 1]} : vector<16x64xf32> to vector<8x64xf32>
    %136 = tpu.concatenate %134, %135 in 1 : vector<8x64xf32>, vector<8x64xf32> -> vector<8x128xf32>
    %137 = vector.extract_strided_slice %72 {offsets = [0, 0], sizes = [16, 1], strides = [1, 1]} : vector<16x8xf32> to vector<16x1xf32>
    %138 = vector.shape_cast %137 : vector<16x1xf32> to vector<16x1xf32>
    %139 = vector.broadcast %138 : vector<16x1xf32> to vector<16x64xf32>
    %140 = vector.extract_strided_slice %139 {offsets = [0, 0], sizes = [8, 64], strides = [1, 1]} : vector<16x64xf32> to vector<8x64xf32>
    %141 = vector.extract_strided_slice %139 {offsets = [8, 0], sizes = [8, 64], strides = [1, 1]} : vector<16x64xf32> to vector<8x64xf32>
    %142 = tpu.concatenate %140, %141 in 1 : vector<8x64xf32>, vector<8x64xf32> -> vector<8x128xf32>
    %143 = vector.extract_strided_slice %72 {offsets = [0, 1], sizes = [16, 1], strides = [1, 1]} : vector<16x8xf32> to vector<16x1xf32>
    %144 = vector.shape_cast %143 : vector<16x1xf32> to vector<16x1xf32>
    %145 = vector.broadcast %144 : vector<16x1xf32> to vector<16x64xf32>
    %146 = vector.extract_strided_slice %145 {offsets = [0, 0], sizes = [8, 64], strides = [1, 1]} : vector<16x64xf32> to vector<8x64xf32>
    %147 = vector.extract_strided_slice %145 {offsets = [8, 0], sizes = [8, 64], strides = [1, 1]} : vector<16x64xf32> to vector<8x64xf32>
    %148 = tpu.concatenate %146, %147 in 1 : vector<8x64xf32>, vector<8x64xf32> -> vector<8x128xf32>
    %149 = vector.extract_strided_slice %72 {offsets = [0, 2], sizes = [16, 1], strides = [1, 1]} : vector<16x8xf32> to vector<16x1xf32>
    %150 = vector.shape_cast %149 : vector<16x1xf32> to vector<16x1xf32>
    %151 = vector.broadcast %150 : vector<16x1xf32> to vector<16x64xf32>
    %152 = vector.extract_strided_slice %151 {offsets = [0, 0], sizes = [8, 64], strides = [1, 1]} : vector<16x64xf32> to vector<8x64xf32>
    %153 = vector.extract_strided_slice %151 {offsets = [8, 0], sizes = [8, 64], strides = [1, 1]} : vector<16x64xf32> to vector<8x64xf32>
    %154 = tpu.concatenate %152, %153 in 1 : vector<8x64xf32>, vector<8x64xf32> -> vector<8x128xf32>
    %155 = vector.extract_strided_slice %72 {offsets = [0, 3], sizes = [16, 1], strides = [1, 1]} : vector<16x8xf32> to vector<16x1xf32>
    %156 = vector.shape_cast %155 : vector<16x1xf32> to vector<16x1xf32>
    %157 = vector.broadcast %156 : vector<16x1xf32> to vector<16x64xf32>
    %158 = vector.extract_strided_slice %157 {offsets = [0, 0], sizes = [8, 64], strides = [1, 1]} : vector<16x64xf32> to vector<8x64xf32>
    %159 = vector.extract_strided_slice %157 {offsets = [8, 0], sizes = [8, 64], strides = [1, 1]} : vector<16x64xf32> to vector<8x64xf32>
    %160 = tpu.concatenate %158, %159 in 1 : vector<8x64xf32>, vector<8x64xf32> -> vector<8x128xf32>
    %161 = vector.extract_strided_slice %72 {offsets = [0, 4], sizes = [16, 1], strides = [1, 1]} : vector<16x8xf32> to vector<16x1xf32>
    %162 = vector.shape_cast %161 : vector<16x1xf32> to vector<16x1xf32>
    %163 = vector.broadcast %162 : vector<16x1xf32> to vector<16x64xf32>
    %164 = vector.extract_strided_slice %163 {offsets = [0, 0], sizes = [8, 64], strides = [1, 1]} : vector<16x64xf32> to vector<8x64xf32>
    %165 = vector.extract_strided_slice %163 {offsets = [8, 0], sizes = [8, 64], strides = [1, 1]} : vector<16x64xf32> to vector<8x64xf32>
    %166 = tpu.concatenate %164, %165 in 1 : vector<8x64xf32>, vector<8x64xf32> -> vector<8x128xf32>
    %167 = vector.extract_strided_slice %72 {offsets = [0, 5], sizes = [16, 1], strides = [1, 1]} : vector<16x8xf32> to vector<16x1xf32>
    %168 = vector.shape_cast %167 : vector<16x1xf32> to vector<16x1xf32>
    %169 = vector.broadcast %168 : vector<16x1xf32> to vector<16x64xf32>
    %170 = vector.extract_strided_slice %169 {offsets = [0, 0], sizes = [8, 64], strides = [1, 1]} : vector<16x64xf32> to vector<8x64xf32>
    %171 = vector.extract_strided_slice %169 {offsets = [8, 0], sizes = [8, 64], strides = [1, 1]} : vector<16x64xf32> to vector<8x64xf32>
    %172 = tpu.concatenate %170, %171 in 1 : vector<8x64xf32>, vector<8x64xf32> -> vector<8x128xf32>
    %173 = vector.extract_strided_slice %72 {offsets = [0, 6], sizes = [16, 1], strides = [1, 1]} : vector<16x8xf32> to vector<16x1xf32>
    %174 = vector.shape_cast %173 : vector<16x1xf32> to vector<16x1xf32>
    %175 = vector.broadcast %174 : vector<16x1xf32> to vector<16x64xf32>
    %176 = vector.extract_strided_slice %175 {offsets = [0, 0], sizes = [8, 64], strides = [1, 1]} : vector<16x64xf32> to vector<8x64xf32>
    %177 = vector.extract_strided_slice %175 {offsets = [8, 0], sizes = [8, 64], strides = [1, 1]} : vector<16x64xf32> to vector<8x64xf32>
    %178 = tpu.concatenate %176, %177 in 1 : vector<8x64xf32>, vector<8x64xf32> -> vector<8x128xf32>
    %179 = vector.extract_strided_slice %72 {offsets = [0, 7], sizes = [16, 1], strides = [1, 1]} : vector<16x8xf32> to vector<16x1xf32>
    %180 = vector.shape_cast %179 : vector<16x1xf32> to vector<16x1xf32>
    %181 = vector.broadcast %180 : vector<16x1xf32> to vector<16x64xf32>
    %182 = vector.extract_strided_slice %181 {offsets = [0, 0], sizes = [8, 64], strides = [1, 1]} : vector<16x64xf32> to vector<8x64xf32>
    %183 = vector.extract_strided_slice %181 {offsets = [8, 0], sizes = [8, 64], strides = [1, 1]} : vector<16x64xf32> to vector<8x64xf32>
    %184 = tpu.concatenate %182, %183 in 1 : vector<8x64xf32>, vector<8x64xf32> -> vector<8x128xf32>
    %cst_21 = arith.constant 0.000000e+00 : f32
    %185 = vector.broadcast %cst_21 : f32 to vector<8x128xf32>
    %186 = vector.extract_strided_slice %70 {offsets = [0, 0, 0], sizes = [1, 8, 128], strides = [1, 1, 1]} : vector<8x8x128xf32> to vector<1x8x128xf32>
    %187 = vector.shape_cast %186 : vector<1x8x128xf32> to vector<8x128xf32>
    %188 = arith.mulf %187, %185 : vector<8x128xf32>
    %189 = arith.addf %188, %80 : vector<8x128xf32>
    %190 = vector.extract_strided_slice %70 {offsets = [1, 0, 0], sizes = [1, 8, 128], strides = [1, 1, 1]} : vector<8x8x128xf32> to vector<1x8x128xf32>
    %191 = vector.shape_cast %190 : vector<1x8x128xf32> to vector<8x128xf32>
    %192 = arith.mulf %191, %189 : vector<8x128xf32>
    %193 = arith.addf %192, %88 : vector<8x128xf32>
    %194 = vector.extract_strided_slice %70 {offsets = [2, 0, 0], sizes = [1, 8, 128], strides = [1, 1, 1]} : vector<8x8x128xf32> to vector<1x8x128xf32>
    %195 = vector.shape_cast %194 : vector<1x8x128xf32> to vector<8x128xf32>
    %196 = arith.mulf %195, %193 : vector<8x128xf32>
    %197 = arith.addf %196, %96 : vector<8x128xf32>
    %198 = vector.extract_strided_slice %70 {offsets = [3, 0, 0], sizes = [1, 8, 128], strides = [1, 1, 1]} : vector<8x8x128xf32> to vector<1x8x128xf32>
    %199 = vector.shape_cast %198 : vector<1x8x128xf32> to vector<8x128xf32>
    %200 = arith.mulf %199, %197 : vector<8x128xf32>
    %201 = arith.addf %200, %104 : vector<8x128xf32>
    %202 = vector.extract_strided_slice %70 {offsets = [4, 0, 0], sizes = [1, 8, 128], strides = [1, 1, 1]} : vector<8x8x128xf32> to vector<1x8x128xf32>
    %203 = vector.shape_cast %202 : vector<1x8x128xf32> to vector<8x128xf32>
    %204 = arith.mulf %203, %201 : vector<8x128xf32>
    %205 = arith.addf %204, %112 : vector<8x128xf32>
    %206 = vector.extract_strided_slice %70 {offsets = [5, 0, 0], sizes = [1, 8, 128], strides = [1, 1, 1]} : vector<8x8x128xf32> to vector<1x8x128xf32>
    %207 = vector.shape_cast %206 : vector<1x8x128xf32> to vector<8x128xf32>
    %208 = arith.mulf %207, %205 : vector<8x128xf32>
    %209 = arith.addf %208, %120 : vector<8x128xf32>
    %210 = vector.extract_strided_slice %70 {offsets = [6, 0, 0], sizes = [1, 8, 128], strides = [1, 1, 1]} : vector<8x8x128xf32> to vector<1x8x128xf32>
    %211 = vector.shape_cast %210 : vector<1x8x128xf32> to vector<8x128xf32>
    %212 = arith.mulf %211, %209 : vector<8x128xf32>
    %213 = arith.addf %212, %128 : vector<8x128xf32>
    %214 = vector.extract_strided_slice %70 {offsets = [7, 0, 0], sizes = [1, 8, 128], strides = [1, 1, 1]} : vector<8x8x128xf32> to vector<1x8x128xf32>
    %215 = vector.shape_cast %214 : vector<1x8x128xf32> to vector<8x128xf32>
    %216 = arith.mulf %215, %213 : vector<8x128xf32>
    %217 = arith.addf %216, %136 : vector<8x128xf32>
    %218 = vector.shape_cast %189 : vector<8x128xf32> to vector<1x8x128xf32>
    %219 = vector.shape_cast %193 : vector<8x128xf32> to vector<1x8x128xf32>
    %220 = vector.shape_cast %197 : vector<8x128xf32> to vector<1x8x128xf32>
    %221 = vector.shape_cast %201 : vector<8x128xf32> to vector<1x8x128xf32>
    %222 = vector.shape_cast %205 : vector<8x128xf32> to vector<1x8x128xf32>
    %223 = vector.shape_cast %209 : vector<8x128xf32> to vector<1x8x128xf32>
    %224 = vector.shape_cast %213 : vector<8x128xf32> to vector<1x8x128xf32>
    %225 = vector.shape_cast %217 : vector<8x128xf32> to vector<1x8x128xf32>
    %226 = tpu.concatenate %218, %219, %220, %221, %222, %223, %224, %225 in 0 : vector<1x8x128xf32>, vector<1x8x128xf32>, vector<1x8x128xf32>, vector<1x8x128xf32>, vector<1x8x128xf32>, vector<1x8x128xf32>, vector<1x8x128xf32>, vector<1x8x128xf32> -> vector<8x8x128xf32>
    %227 = vector.shape_cast %142 : vector<8x128xf32> to vector<1x8x128xf32>
    %228 = vector.shape_cast %148 : vector<8x128xf32> to vector<1x8x128xf32>
    %229 = vector.shape_cast %154 : vector<8x128xf32> to vector<1x8x128xf32>
    %230 = vector.shape_cast %160 : vector<8x128xf32> to vector<1x8x128xf32>
    %231 = vector.shape_cast %166 : vector<8x128xf32> to vector<1x8x128xf32>
    %232 = vector.shape_cast %172 : vector<8x128xf32> to vector<1x8x128xf32>
    %233 = vector.shape_cast %178 : vector<8x128xf32> to vector<1x8x128xf32>
    %234 = vector.shape_cast %184 : vector<8x128xf32> to vector<1x8x128xf32>
    %235 = tpu.concatenate %227, %228, %229, %230, %231, %232, %233, %234 in 0 : vector<1x8x128xf32>, vector<1x8x128xf32>, vector<1x8x128xf32>, vector<1x8x128xf32>, vector<1x8x128xf32>, vector<1x8x128xf32>, vector<1x8x128xf32>, vector<1x8x128xf32> -> vector<8x8x128xf32>
    %236 = arith.mulf %226, %235 : vector<8x8x128xf32>
    %cst_22 = arith.constant dense<0.000000e+00> : vector<8x128xf32>
    %237 = vector.multi_reduction <add>, %236, %cst_22 [1] : vector<8x8x128xf32> to vector<8x128xf32>
    %238 = vector.extract_strided_slice %237 {offsets = [0, 0], sizes = [8, 64], strides = [1, 1]} : vector<8x128xf32> to vector<8x64xf32>
    %239 = vector.extract_strided_slice %237 {offsets = [0, 64], sizes = [8, 64], strides = [1, 1]} : vector<8x128xf32> to vector<8x64xf32>
    %240 = arith.addf %238, %239 : vector<8x64xf32>
    %c0_23 = arith.constant 0 : index
    %c0_24 = arith.constant 0 : index
    %241 = vector.load %arg8[%c0_23, %c0_24] : memref<1x64xf32, #tpu.memory_space<vmem>>, vector<1x64xf32>
    %242 = vector.broadcast %241 : vector<1x64xf32> to vector<8x64xf32>
    %243 = arith.mulf %39, %242 : vector<8x64xf32>
    %244 = arith.addf %240, %243 : vector<8x64xf32>
    %245 = arith.negf %5 : vector<8x64xf32>
    %246 = math.exp %245 : vector<8x64xf32>
    %cst_25 = arith.constant 1.000000e+00 : f32
    %247 = vector.broadcast %cst_25 : f32 to vector<8x64xf32>
    %248 = arith.addf %247, %246 : vector<8x64xf32>
    %249 = arith.divf %247, %248 : vector<8x64xf32>
    %250 = arith.mulf %5, %249 : vector<8x64xf32>
    %251 = arith.mulf %244, %250 : vector<8x64xf32>
    %c0_26 = arith.constant 0 : index
    %c0_27 = arith.constant 0 : index
    %252 = vector.load %arg9[%c0_26, %c0_27] : memref<64x32xf32, #tpu.memory_space<vmem>>, vector<64x32xf32>
    %cst_28 = arith.constant dense<0.000000e+00> : vector<8x32xf32>
    %253 = tpu.matmul %251, %252, %cst_28 {dimension_numbers = #tpu.dot_dimension_numbers<[1], [0], [0], [1], [0, 0, 1, 1], [], []>} : vector<8x64xf32>, vector<64x32xf32>, vector<8x32xf32> -> vector<8x32xf32>
    %c0_29 = arith.constant 0 : index
    %c0_30 = arith.constant 0 : index
    %c0_31 = arith.constant 0 : index
    %254 = vector.load %arg10[%c0_29, %c0_30, %c0_31] : memref<1x8x32xf32, #tpu.memory_space<vmem>>, vector<1x8x32xf32>
    %255 = vector.shape_cast %254 : vector<1x8x32xf32> to vector<8x32xf32>
    %256 = vector.shape_cast %253 : vector<8x32xf32> to vector<1x8x32xf32>
    tpu.vector_store %arg10[%c0_29, %c0_30, %c0_31], %256 {strides = array<i32>} : memref<1x8x32xf32, #tpu.memory_space<vmem>>, vector<1x8x32xf32>,
    return
  }
  func.func @transform_0(%arg0: i32) -> (i32, i32, i32) {
    %c0_i32 = arith.constant 0 : i32
    %c0_i32_0 = arith.constant 0 : i32
    %c0_i32_1 = arith.constant 0 : i32
    return %arg0, %c0_i32, %c0_i32_0 : i32, i32, i32
  }
  func.func @transform_1(%arg0: i32) -> (i32, i32) {
    %c0_i32 = arith.constant 0 : i32
    %c0_i32_0 = arith.constant 0 : i32
    %c0_i32_1 = arith.constant 0 : i32
    return %c0_i32, %c0_i32_0 : i32, i32
  }
  func.func @transform_2(%arg0: i32) -> (i32, i32) {
    %c0_i32 = arith.constant 0 : i32
    %c0_i32_0 = arith.constant 0 : i32
    %c0_i32_1 = arith.constant 0 : i32
    return %c0_i32, %c0_i32_0 : i32, i32
  }
  func.func @transform_3(%arg0: i32) -> (i32, i32) {
    %c0_i32 = arith.constant 0 : i32
    %c0_i32_0 = arith.constant 0 : i32
    %c0_i32_1 = arith.constant 0 : i32
    return %c0_i32, %c0_i32_0 : i32, i32
  }
  func.func @transform_4(%arg0: i32) -> (i32, i32) {
    %c0_i32 = arith.constant 0 : i32
    %c0_i32_0 = arith.constant 0 : i32
    %c0_i32_1 = arith.constant 0 : i32
    return %c0_i32, %c0_i32_0 : i32, i32
  }
  func.func @transform_5(%arg0: i32) -> (i32, i32) {
    %c0_i32 = arith.constant 0 : i32
    %c0_i32_0 = arith.constant 0 : i32
    %c0_i32_1 = arith.constant 0 : i32
    return %c0_i32, %c0_i32_0 : i32, i32
  }
  func.func @transform_6(%arg0: i32) -> (i32, i32) {
    %c0_i32 = arith.constant 0 : i32
    %c0_i32_0 = arith.constant 0 : i32
    %c0_i32_1 = arith.constant 0 : i32
    return %c0_i32, %c0_i32_0 : i32, i32
  }
  func.func @transform_7(%arg0: i32) -> (i32, i32) {
    %c0_i32 = arith.constant 0 : i32
    %c0_i32_0 = arith.constant 0 : i32
    %c0_i32_1 = arith.constant 0 : i32
    return %c0_i32, %c0_i32_0 : i32, i32
  }
  func.func @transform_8(%arg0: i32) -> (i32, i32) {
    %c0_i32 = arith.constant 0 : i32
    %c0_i32_0 = arith.constant 0 : i32
    %c0_i32_1 = arith.constant 0 : i32
    return %c0_i32, %c0_i32_0 : i32, i32
  }
  func.func @transform_9(%arg0: i32) -> (i32, i32, i32) {
    %c0_i32 = arith.constant 0 : i32
    %c0_i32_0 = arith.constant 0 : i32
    %c0_i32_1 = arith.constant 0 : i32
    return %arg0, %c0_i32, %c0_i32_0 : i32, i32, i32
  }
}

</mosaic_0001>

<bundles_post_ra>
// kernel: tpu_custom_call.1
= control target key start
LH: loop header
LB: loop body
LE: loop exit
PB: predicated region body
PF: predicated region fallthrough
CT: control target
= control target key end

     0   :  { %s2394_s0 = inlined_call_operand.hbm [shape: f32[2,8,32], index: 0, kind: input, shape index: {}]   ;;  %s2395_s1 = inlined_call_operand.vmem [shape: f32[32,128], index: 1, kind: input, shape index: {}]   ;;  %s2396_s2 = inlined_call_operand.hbm [shape: f32[4,64], index: 2, kind: input, shape index: {}]   ;;  %s2397_s3 = inlined_call_operand.vmem [shape: f32[1,64], index: 3, kind: input, shape index: {}]   ;;  %s2398_s4 = inlined_call_operand.vmem [shape: f32[64,128], index: 4, kind: input, shape index: {}]   ;;  %s2399_s5 = inlined_call_operand.hbm [shape: f32[1,64], index: 5, kind: input, shape index: {}]   ;;  %s2400_s6 = inlined_call_operand.vmem [shape: f32[8,128], index: 6, kind: input, shape index: {}]   ;;  %s2401_s7 = inlined_call_operand.vmem [shape: f32[1,64], index: 7, kind: input, shape index: {}]   ;;  %s2402_s8 = inlined_call_operand.vmem [shape: f32[64,32], index: 8, kind: input, shape index: {}]   ;;  %s2403_s9 = inlined_call_operand.hbm [shape: f32[2,8,32], index: 9, kind: output, shape index: {}]  }
   0x1   :  { %2409 = sst [smem:[#allocation14_spill]] %s2396_s2 }
   0x2   :  { %2410 = sst [smem:[#allocation15_spill]] %s2399_s5 }
   0x3   :  { %14 = vsyncpa [#allocation3], 0 }
   0x4   :  { %16 = vsyncpa [#allocation3 + $0x1], 0 }
   0x5   :  { %17 = vsyncpa [#allocation6], 0 }
   0x6   :  { %18 = vsyncpa [#allocation4], 0 }
   0x7   :  { %20 = vsyncpa [#allocation4 + $0x1], 0  ;;  %s1886_s30 = smov 0   ;;  %s1888_s10 = smov 0  }
   0x8   :  { %s1890_s11 = smov 0   ;;  %s1892_s12 = smov 0  }
   0x9 LB: > { %2411 = sst [smem:[#allocation12_spill]] %s1813_s11  ;;  %s1907_s13 = sadd.s32 4294967295, %s1817_s12   ;;  %s1817_s12 = sphi %s1892_s12, %s2433_s12   ;;  %s1813_s11 = sphi %s1890_s11, %s2430_s11   ;;  %s1809_s10 = sphi %s1888_s10, %s2432_s10   ;;  %s1805_s30 = sphi %s1886_s30, %s2431_s30  }
   0xa   : > { %s1436_s14 = sadd.s32 4294967294, %s1817_s12   ;;  %p46_p0 = scmp.ne.s32.totalorder %s1809_s10, %s1805_s30 }
   0xb   : > { %p2404_p1 = scmp.eq.s32.totalorder %s1907_s13, 0  ;;  %p244_p3 = scmp.eq.s32.totalorder %s1436_s14, 1 }
   0xc   : > { %p1437_p5 = scmp.ge.s32.totalorder %s1817_s12, 1  ;;  %p251_p7 = scmp.lt.s32.totalorder %s1817_s12, 3 }
   0xd   : > { %p1916_p4 = por %p2404_p1, %p46_p0  ;;  %p1921_p6 = por %p244_p3, %p46_p0 }
   0xe   : > { %p1926_p8 = pnand %p1437_p5, %p251_p7  ;;  %s1819_s18 = smov [#allocation5]  }
   0xf   : > { %s2412_s15 = scalar_select %p1916_p4, 1, 0 }
  0x10   : > { %s2413_s16 = scalar_select %p1921_p6, 1, 0 }
  0x11   : > { %s2414_s17 = scalar_select %p1926_p8, 1, 0 }
  0x12   : > { %s267_s19 = sshll.u32 %s1819_s18, 4  ;;  %p1544_p10 = pneg %p1926_p8  ;;  %s268_s19 = int_to_ptr.vmem [resolvable:$true] %s267_s19 }
  0x13   : > { %s1820_s20 = smov [#allocation7]   ;;  %s1940_s23 = sadd.s32 1, %s1817_s12  }
  0x14   : > { %s284_s21 = sshll.u32 %s1820_s20, 4  ;;  %p1935_p11 = pnand %p1544_p10, %p2404_p1  ;;  %s285_s21 = int_to_ptr.vmem [resolvable:$true] %s284_s21 }
  0x15   : > { %s30_s24 = ssub.s32 %s1817_s12, %s1940_s23  ;;  %s1680_s25 = scalar_lea.vmem %s268_s19, 64 }
  0x16   : > { %p1671_p12 = pneg %p1935_p11  ;;  %p1681_p13 = scmp.ne.s32.totalorder %s268_s19, %s1680_s25 }
  0x17   : > { %p1688_p5 = scmp.lt.s32.totalorder %s268_s19, %s268_s19  ;;  %p1689_p7 = scmp.lt.s32.totalorder %s1680_s25, %s1680_s25 }
  0x18   : > { %p1683_p0 = pnand %p1681_p13, %p1671_p12 }
  0x19   : > { %p1690_p10 = por %p1689_p7, %p1688_p5 }
  0x1a   : > { %p1684_p3 = pneg %p1683_p0 }
  0x1c   : > { %p1691_p9 = pnand %p1690_p10, %p1684_p3 }
  0x1e   : > { %1694 = shalt.err (!%p1691_p9)
}
  0x1f   : > { %s2416_s2 = sld [smem:[#allocation14_spill]]  ;;  %s1706_s28 = scalar_lea.vmem %s285_s21, 16 }
  0x20   : > { %p1707_p1 = scmp.ne.s32.totalorder %s285_s21, %s1706_s28  ;;  %s1713_s29 = scalar_lea.vmem %s285_s21, 32 }
  0x21   : > { %p1714_p13 = scmp.lt.s32.totalorder %s285_s21, %s285_s21  ;;  %p1715_p0 = scmp.lt.s32.totalorder %s1713_s29, %s1706_s28 }
  0x22   : > { %p1709_p2 = pnand %p1707_p1, %p1671_p12 }
  0x23   : > { %p1716_p4 = por %p1715_p0, %p1714_p13 }
  0x24   : > { %p1710_p6 = pneg %p1709_p2 }
  0x25   : > { %1547 = dma.hbm_to_vmem [thread:$0]  (!%p1935_p11), %s2416_s2, 64, %s268_s19, [#allocation6]  }
  0x26   : > { %p1717_p5 = pnand %p1716_p4, %p1710_p6 }
  0x28   : > { %1720 = shalt.err (!%p1717_p5)
}
  0x29   : > { %s2417_s5 = sld [smem:[#allocation15_spill]]  ;;  %p31_p1 = scmp.eq.s32.totalorder %s30_s24, 0 }
  0x2a   : > { %s33_s19 = sadd.s32 1, %s1813_s11  ;;  %p40_p2 = scmp.ne.s32.totalorder %s1813_s11, %s1809_s10 }
  0x2b   : > { %p41_p4 = scmp.eq.s32.totalorder %s1817_s12, 0  ;;  %p2419_p9 = scmp.eq.s32.totalorder %s1907_s13, 1 }
  0x2c   : > { %s1967_s20 = scalar_select %p31_p1, %s1813_s11, %s33_s19  }
  0x2d   : > { %p42_p6 = por %p41_p4, %p40_p2  ;;  %p1971_p12 = por %p2419_p9, %p40_p2 }
  0x2e   : > { %2418 = sst [smem:[#allocation13_spill]] %s1967_s20  ;;  %p1561_p3 = scmp.lt.s32.totalorder %s1817_s12, 2 }
  0x2f   : > { %1550 = dma.hbm_to_vmem [thread:$0]  (!%p1935_p11), %s2417_s5, 16, %s285_s21, [#allocation6]  }
  0x30   : > { %s2420_s22 = scalar_select %p1971_p12, 1, 0 }
  0x31   : > { %s304_s25 = sand.u32 1, %s1813_s11   ;;  %s1442_s27 = sshll.u32 %s1817_s12, 7 }
  0x32   : > { %s1441_s26 = sshll.u32 %s304_s25, 3  ;;  %s1981_s21 = scalar_lea.hbm %s2394_s0, %s1442_s27 }
  0x33   : > { %s308_s24 = scalar_lea.vmem [#allocation2], %s1441_s26  ;;  %p1983_p11 = pnand %p1561_p3, %p42_p6 }
  0x34   : > { %s315_s14 = sshll.u32 %s308_s24, 4  ;;  %s305_s19 = scalar_lea.sflag [#allocation3], %s304_s25  ;;  %s316_s14 = int_to_ptr.vmem [resolvable:$true] %s315_s14 }
  0x35   : > { %s1721_s2 = scalar_lea.hbm %s1981_s21, 128  ;;  %p1723_p10 = pneg %p1983_p11 }
  0x36   : > { %p1722_p7 = scmp.ne.s32.totalorder %s1981_s21, %s1721_s2  ;;  %s1726_s29 = scalar_lea.hbm %s2394_s0, 256 }
  0x37   : > { %p1727_p5 = scmp.lt.s32.totalorder %s1981_s21, %s2394_s0  ;;  %p1728_p1 = scmp.lt.s32.totalorder %s1726_s29, %s1721_s2 }
  0x38   : > { %p1724_p13 = pnand %p1723_p10, %p1722_p7 }
  0x39   : > { %p1729_p2 = por %p1728_p1, %p1727_p5 }
  0x3a   : > { %p1725_p0 = pneg %p1724_p13 }
  0x3c   : > { %p1730_p4 = pnand %p1729_p2, %p1725_p0 }
  0x3e   : > { %1733 = shalt.err (!%p1730_p4)
}
  0x3f   : > { %s1734_s24 = scalar_lea.vmem %s316_s14, 128  ;;  %s1821_s25 = smov [#allocation2]  }
  0x40   : > { %p1735_p6 = scmp.ne.s32.totalorder %s316_s14, %s1734_s24  ;;  %s1739_s20 = sshll.u32 %s1821_s25, 4  ;;  %s1740_s20 = int_to_ptr.vmem [resolvable:$false] %s1739_s20 }
  0x41   : > { %s1741_s11 = scalar_lea.vmem %s1740_s20, 256  ;;  %p1742_p7 = scmp.lt.s32.totalorder %s316_s14, %s1740_s20 }
  0x42   : > { %p1737_p9 = pnand %p1735_p6, %p1723_p10  ;;  %p1743_p13 = scmp.lt.s32.totalorder %s1741_s11, %s1734_s24 }
  0x44   : > { %p1738_p3 = pneg %p1737_p9  ;;  %p1744_p12 = por %p1743_p13, %p1742_p7 }
  0x46   : > { %p1745_p8 = pnand %p1744_p12, %p1738_p3 }
  0x48   : > { %1748 = shalt.err (!%p1745_p8)
}
  0x49   : > { %1554 = dma.hbm_to_vmem [thread:$0]  (!%p1983_p11), %s1981_s21, 128, %s316_s14, %s305_s19  }
  0x4a   : > { %p2422_p0 = scmp.ne.s32.totalorder %s2414_s17, 0 }
  0x4b   : > { %s2004_s2 = sand.u32 (!%p2422_p0), 1, %s1809_s10   ;;  %p2423_p12 = scmp.ne.s32.totalorder (!%p2422_p0), %s2412_s15, 0 }
  0x4c   : > { %324 = sbr.rel (%p2422_p0) target bundleno = 1395 (0x573), region = 56  ;;  %s1444_s5 = sshll.u32 (!%p2422_p0), %s2004_s2, 3 }
  0x4d   : > { %s327_s20 = scalar_lea.sflag (!%p2422_p0), [#allocation3], %s2004_s2  ;;  %s330_s11 = scalar_lea.vmem (!%p2422_p0), [#allocation2], %s1444_s5 }
  0x51   : > { %1792 = dma.done.wait (%p2423_p12), %s327_s20, 128  }
  0x52   : > { %1794 = vsyncadd (%p2423_p12), %s327_s20, 4294967168  ;;  %p2424_p8 = scmp.eq.s32.totalorder %s1907_s13, 0 }
  0x54   : > { %1796 = dma.done.wait (%p2424_p8), [#allocation6], 80   ;;  %p2425_p11 = pmov %p2424_p8 }
  0x55   : > { %v1822_v0 = vmov 0.0   ;;  %vm1823_vm0 = vmmov 0   ;;  %v377_v1 = vld [vmem:[%s2395_s1 + $0x18] sm:$0xff]  ;;  %v376_v2 = vld [vmem:[%s2395_s1 + $0x10] sm:$0xff]  ;;  %v375_v3 = vld [vmem:[%s2395_s1 + $0x8] sm:$0xff]  ;;  %vm378_vm1 = vcmask 261120   ;;  %v454_v14 = vlaneseq }
  0x56   : > { %1798 = vsyncadd (%p2425_p11), [#allocation6], 4294967216  ;;  %1483 = vmatprep.subr.mxu0 %v1822_v0  ;;  %1491 = vmatprep.mubr.msk.f32.mxu0 %vm1823_vm0, %v1822_v0  ;;  %v374_v4 = vld [vmem:[%s2395_s1] sm:$0xff]  ;;  %v511_v6 = vld [vmem:[%s2398_s4 + $0x38] sm:$0xff]  ;;  %vm469_vm2 = vcmask 1042432   ;;  %vm479_vm3 = vcmask 1041408  }
  0x57   : > { %1494 = vmatprep.subr.mxu1 %v1822_v0  ;;  %1510 = vmatprep.mubr.msk.f32.mxu1 %vm1823_vm0, %v1822_v0  ;;  %v373_v5 = vld [vmem:[%s330_s11] sm:$0xff]  ;;  %v510_v7 = vld [vmem:[%s2398_s4 + $0x30] sm:$0xff]  ;;  %v507_v10 = vld [vmem:[%s2398_s4 + $0x18] sm:$0xff]  ;;  %v2074_v15 = vshrl.u32 %v454_v14, 7  ;;  %vm489_vm4 = vcmask 1040384   ;;  %vm512_vm5 = vcmask 523264  }
  0x58   : > { %1484 = vmatpush3.msra.mxu0 %v377_v1  ;;  %1495 = vmatpush3.msra.mxu1 %v511_v6  ;;  %v509_v8 = vld [vmem:[%s2398_s4 + $0x28] sm:$0xff]  ;;  %v508_v9 = vld [vmem:[%s2398_s4 + $0x20] sm:$0xff]  ;;  %v506_v11 = vld [vmem:[%s2398_s4 + $0x10] sm:$0xff]  ;;  %s1824_s20 = smov 48   ;;  %s1825_s11 = smov 64   ;;  %v1827_v6 = vmov 1  }
  0x59   : > { %1485 = vmatprep.subr.mxu0 %v1822_v0  ;;  %1496 = vmatprep.subr.mxu1 %v1822_v0  ;;  %v505_v12 = vld [vmem:[%s2398_s4 + $0x8] sm:$0xff]  ;;  %v504_v13 = vld [vmem:[%s2398_s4] sm:$0xff]  ;;  %v456_v16 = vsub.s32 3, %v2074_v15  ;;  %v452_v17 = vld [vmem:[#allocation5] sm:$0xf]  ;;  %v2078_v18 = vsub.s32 0, %v2074_v15 }
  0x5a   : > { %1486 = vmatpush3.msra.mxu0 %v376_v2  ;;  %1497 = vmatpush3.msra.mxu1 %v510_v7  ;;  %v483_v20 = vsub.s32 1, %v2074_v15  ;;  %v1449_v22 = vld [vmem:[%s2397_s3] ss:$0 sm:$0xff]  ;;  %v493_v24 = vsub.s32 2, %v2074_v15  ;;  %v1452_v47 = vld [vmem:[#allocation7] ss:$0 sm:$0xff] }
  0x5b   : > { %1487 = vmatprep.subr.mxu0 %v1822_v0  ;;  %1498 = vmatprep.subr.mxu1 %v1822_v0  ;;  %v457_v19 = vrot.slane %v452_v17, %v456_v16  ;;  %v474_v23 = vrot.slane %v452_v17, %v2078_v18  ;;  %v1831_v14 = vmov 4   ;;  %vm1240_vm8 = vcmask 1041409   ;;  %s372_s28 = scalar_lea.vmem [#allocation8], %s1444_s5  ;;  %p2426_p5 = scmp.ne.s32.totalorder %s2420_s22, 0 }
  0x5c   : > { %1488 = vmatpush3.msra.mxu0 %v375_v3  ;;  %1499 = vmatpush3.msra.mxu1 %v509_v8  ;;  %v484_v30 = vrot.slane %v452_v17, %v483_v20  ;;  %v494_v35 = vrot.slane %v452_v17, %v493_v24  ;;  %vm1243_vm9 = vcmask 1042434   ;;  %vm1246_vm10 = vcmask 1043459   ;;  %s1347_s29 = sshll.u32 %s372_s28, 4  ;;  %s2352_s29 = int_to_ptr.vmem [resolvable:$true] %s1347_s29 }
  0x5d   : > { %1489 = vmatprep.subr.mxu0 %v1822_v0  ;;  %1500 = vmatprep.subr.mxu1 %v1822_v0  ;;  %vm1249_vm11 = vcmask 1044484   ;;  %vm1252_vm12 = vcmask 1045509   ;;  %vm1255_vm13 = vcmask 1046534   ;;  %vm1258_vm14 = vcmask 1047559   ;;  %s1749_s15 = scalar_lea.vmem %s2352_s29, 128 }
  0x5e   : > { %1490 = vmatpush3.msra.mxu0 %v374_v4  ;;  %1501 = vmatpush3.msra.mxu1 %v508_v9  ;;  %p1750_p10 = scmp.ne.s32.totalorder %s2352_s29, %s1749_s15 }
  0x5f   : > { %1492 = vmatmul.mubr.msk.f32.vlgmr.msra.gmra.mxu0 %vm378_vm1, %v373_v5  ;;  %1513 = vmatprep.subr.mxu0 %v1822_v0  ;;  %v1826_v5 = vmov 0  }
  0x60   : > { %1529 = vmatprep.mubr.msk.f32.mxu0 %vm1823_vm0, %v1822_v0  ;;  %1502 = vmatprep.subr.mxu1 %v1822_v0  ;;  %p1751_p1 = pnand %p1750_p10, %p2426_p5 }
  0x61   : > { %1503 = vmatpush3.msra.mxu1 %v507_v10 }
  0x62   : > { %1504 = vmatprep.subr.mxu1 %v1822_v0  ;;  %p1752_p2 = pneg %p1751_p1 }
  0x63   : > { %1505 = vmatpush3.msra.mxu1 %v506_v11  ;;  %v1828_v11 = vmov 2  }
  0x64   : > { %1506 = vmatprep.subr.mxu1 %v1822_v0 }
  0x65   : > { %1507 = vmatpush3.msra.mxu1 %v505_v12  ;;  %v1829_v12 = vmov 3  }
  0x66   : > { %1508 = vmatprep.subr.mxu1 %v1822_v0 }
  0x67   : > { %1509 = vmatpush3.msra.mxu1 %v504_v13  ;;  %v1830_v13 = vmov 5  }
 0x11f   : > { %v2083_v21 = vpop.f32.mrf.mxu0 }
 0x120   : > { %v458_v25 = vmul.f32 %v457_v19, %v2083_v21  ;;  %v467_v26 = vrot.slane %v2083_v21, 5  ;;  %v477_v27 = vrot.slane %v2083_v21, 6  ;;  %v487_v28 = vrot.slane %v2083_v21, 7 }
 0x121   : > { %v1493_v29 = vpop.f32.mrf.mxu0  ;;  %v1832_v19 = vmov 6  }
 0x122   : > { %v465_v31 = vadd.f32 %v1449_v22, %v458_v25  ;;  %v470_v32 = vsel %vm469_vm2, 0.0, %v467_v26  ;;  %v480_v33 = vsel %vm479_vm3, 0.0, %v477_v27  ;;  %v490_v36 = vsel %vm489_vm4, 0.0, %v487_v28 }
 0x123   : > { %v475_v34 = vmul.f32 %v474_v23, %v470_v32  ;;  %v485_v38 = vmul.f32 %v484_v30, %v480_v33  ;;  %v495_v40 = vmul.f32 %v494_v35, %v490_v36  ;;  %v1833_v22 = vmov 7  }
 0x124   : > { %v1454_v23 = vmul.f32 -1.442695, %v2083_v21 }
 0x125   : > { %v476_v37 = vadd.f32 %v475_v34, %v465_v31 }
 0x127   : > { %v486_v39 = vadd.f32 %v485_v38, %v476_v37  ;;  %v892_v38 = vsub.s32 4, %v2074_v15 }
 0x129   : > { %v496_v41 = vadd.f32 %v495_v40, %v486_v39 }
 0x12b   : > { %v1450_v42 = vmul.f32 -1.442695, %v496_v41 }
 0x12d   : > { %1641 = vpow2.f32 %v1450_v42 }
 0x13a   : > { %v1642_v43 = vpop.eup %1641 }
 0x13b   : > { %v500_v44 = vadd.f32 1.0, %v1642_v43 }
 0x13d   : > { %1643 = vrcp.f32 %v500_v44  ;;  %v930_v44 = vsub.s32 6, %v2074_v15 }
 0x14a   : > { %v1644_v45 = vpop.eup %1643 }
 0x14b   : > { %v2098_v46 = vmul.f32 %v1644_v45, %v496_v41  ;;  %v911_v41 = vsub.s32 5, %v2074_v15 }
 0x14d   : > { %1511 = vmatmul.mubr.msk.f32.vlgmr.msra.gmra.mxu1 %vm512_vm5, %v2098_v46 }
 0x20d   : > { %v582_v48 = vpop.f32.mrf.mxu1 }
 0x20e   : > { %v593_v49 = vadd.f32 %v1452_v47, %v582_v48  ;;  %769 = vrot.lane.b32.xlu1 %v582_v48, %s1824_s20  ;;  %734 = vrot.lane.b32.xlu0 %v582_v48, %s1825_s11  ;;  %s1334_s20 = scalar_lea.sflag [#allocation4], %s2004_s2 }
 0x20f   : > { %v1512_v50 = vpop.f32.mrf.mxu1 }
 0x210   : > { %v597_v51 = vand.u32 2147483647, %v593_v49  ;;  %v594_v62 = vmax.f32 %v593_v49, 0.0  ;;  %vm595_vm7 = vcmp.ne.f32.partialorder %v593_v49, %v593_v49 }
 0x212   : > { %v598_v52 = vsub.f32 0.0, %v597_v51  ;;  %v949_v51 = vsub.s32 7, %v2074_v15 }
 0x214   : > { %v599_v53 = vmul.f32 1.442695, %v598_v52 }
 0x216   : > { %1645 = vpow2.f32 %v599_v53 }
 0x223   : > { %v1646_v54 = vpop.eup %1645 }
 0x224   : > { %v601_v55 = vadd.f32 1.0, %v1646_v54  ;;  %v604_v56 = vmul.f32 -0.5, %v1646_v54  ;;  %v607_v58 = vand.u32 2147483647, %v1646_v54 }
 0x226   : > { %1647 = vlog2.f32 %v601_v55  ;;  %v605_v57 = vadd.f32 1.0, %v604_v56  ;;  %vm608_vm6 = vcmp.lt.f32.partialorder %v607_v58, 0.0004427343 }
 0x227   : > { %1649 = vpow2.f32 %v1454_v23 }
 0x228   : > { %v606_v61 = vmul.f32 %v1646_v54, %v605_v57 }
 0x233   : > { %v1648_v59 = vpop.eup %1647 }
 0x234   : > { %v603_v60 = vmul.f32 0.6931472, %v1648_v59  ;;  %v1650_v32 = vpop.eup %1649  ;;  %v1834_v59 = vmov 1966171168  }
 0x235   : > { %v1179_v34 = vadd.f32 1.0, %v1650_v32 }
 0x236   : > { %v609_v63 = vsel %vm608_vm6, %v606_v61, %v603_v60  ;;  %v621_v60 = vunpack.c.l.s4 %v1834_v59 }
 0x237   : > { %v610_v1 = vadd.f32 %v609_v63, %v594_v62  ;;  %1651 = vrcp.f32 %v1179_v34 }
 0x238   : > { %v622_v62 = vunpack.c.0.s8 %v621_v60 }
 0x239   : > { %v2103_v2 = vsel %vm595_vm7, %v593_v49, %v610_v1 }
 0x23a   : > { %614 = vrot.lane.b32.xlu0 %v2103_v2, %s1825_s11  ;;  %v612_v25 = vmul.f32 %v2103_v2, %v2098_v46 }
 0x23c   : > { %v2134_v26 = vrot.slane %v612_v25, %v2078_v18  ;;  %v2140_v29 = vrot.slane %v612_v25, %v483_v20  ;;  %v2146_v33 = vrot.slane %v612_v25, %v493_v24  ;;  %v2152_v20 = vrot.slane %v612_v25, %v456_v16 }
 0x23d   : > { %v2157_v24 = vrot.slane %v612_v25, %v892_v38  ;;  %v2162_v43 = vrot.slane %v612_v25, %v911_v41  ;;  %v2168_v48 = vrot.slane %v612_v25, %v930_v44  ;;  %v2178_v53 = vrot.slane %v612_v25, %v949_v51 }
 0x244   : > { %v1652_v47 = vpop.eup %1651 }
 0x245   : > { %v2171_v49 = vmul.f32 %v1652_v47, %v2083_v21 }
 0x247   : > { %v1186_v54 = vrot.slane %v2171_v49, 3  ;;  %v1184_v21 = vrot.slane %v2171_v49, 1  ;;  %v1185_v57 = vrot.slane %v2171_v49, 2 }
 0x280   : > { %v770_v3 = vpop.permute.xlu1 %769  ;;  %v735_v4 = vpop.permute.xlu0 %734 }
 0x281   : > { %772 = vxpose.xlu1.b32.start.end [1/1] (short) (narrow) %v770_v3, 16  ;;  %737 = vxpose.xlu0.b32.start.end [1/1] (short) (narrow) %v735_v4, 16  ;;  %v625_v3 = vsub.s32 %v622_v62, %v2074_v15  ;;  %v2210_v15 = vld [vmem:[%s2400_s6] sm:$0xff] }
 0x29f   : > { %1612 = vset.pattern.permute.xlu1 %v1826_v5 }
 0x2aa   : > { %1621 = vset.pattern.permute.xlu0 %v1827_v6 }
 0x2ac   : > { %v2107_v7 = vpop.permute.xlu0 %614 }
 0x2ad   : > { %v617_v4 = vsel %vm512_vm5, %v2103_v2, %v2107_v7 }
 0x2fd   : > { %v753_v8 = vpop.trf.xlu0  ;;  %v2109_v9 = vpop.trf.xlu1 }
 0x2fe   : > { %826 = vperm.xlu0 %1621, %v753_v8  }
 0x301   : > { %v754_v10 = vpop.trf.xlu0  ;;  %v2115_v17 = vpop.trf.xlu1 }
 0x302   : > { %970 = vperm.xlu0 %1621, %v2109_v9   ;;  %811 = vperm.xlu1 %1612, %v754_v10  }
 0x306   : > { %1625 = vset.pattern.permute.xlu0 %v1828_v11  ;;  %1613 = vset.pattern.permute.xlu1 %v1827_v6 }
 0x307   : > { %845 = vperm.xlu0 %1625, %v753_v8   ;;  %830 = vperm.xlu1 %1613, %v754_v10  }
 0x30b   : > { %979 = vperm.xlu0 %1625, %v2109_v9   ;;  %1614 = vset.pattern.permute.xlu1 %v1828_v11 }
 0x30c   : > { %849 = vperm.xlu1 %1614, %v754_v10  }
 0x30f   : > { %1627 = vset.pattern.permute.xlu0 %v1826_v5 }
 0x310   : > { %960 = vperm.xlu0 %1627, %v2109_v9   ;;  %1615 = vset.pattern.permute.xlu1 %v1829_v12 }
 0x311   : > { %868 = vperm.xlu1 %1615, %v754_v10  }
 0x314   : > { %1630 = vset.pattern.permute.xlu0 %v1830_v13 }
 0x315   : > { %1006 = vperm.xlu0 %1630, %v2109_v9   ;;  %1616 = vset.pattern.permute.xlu1 %v1831_v14 }
 0x316   : > { %887 = vperm.xlu1 %1616, %v754_v10  }
 0x319   : > { %1631 = vset.pattern.permute.xlu0 %v1829_v12 }
 0x31a   : > { %864 = vperm.xlu0 %1631, %v753_v8   ;;  %1617 = vset.pattern.permute.xlu1 %v1830_v13 }
 0x31b   : > { %906 = vperm.xlu1 %1617, %v754_v10  }
 0x31e   : > { %992 = vperm.xlu0 %1631, %v2115_v17  }
 0x31f   : > { %1618 = vset.pattern.permute.xlu1 %v1832_v19 }
 0x320   : > { %925 = vperm.xlu1 %1618, %v754_v10  }
 0x322   : > { %1637 = vset.pattern.permute.xlu0 %v1832_v19 }
 0x324   : > { %1619 = vset.pattern.permute.xlu1 %v1833_v22 }
 0x325   : > { %944 = vperm.xlu1 %1619, %v754_v10  }
 0x329   : > { %1620 = vset.pattern.permute.xlu1 %v1826_v5 }
 0x32a   : > { %806 = vperm.xlu1 %1620, %v753_v8  }
 0x32e   : > { %1622 = vset.pattern.permute.xlu1 %v1831_v14 }
 0x32f   : > { %883 = vperm.xlu1 %1622, %v753_v8  }
 0x333   : > { %1623 = vset.pattern.permute.xlu1 %v1830_v13 }
 0x334   : > { %902 = vperm.xlu1 %1623, %v753_v8  }
 0x338   : > { %1624 = vset.pattern.permute.xlu1 %v1832_v19 }
 0x339   : > { %921 = vperm.xlu1 %1624, %v753_v8  }
 0x33d   : > { %1626 = vset.pattern.permute.xlu1 %v1833_v22 }
 0x33e   : > { %940 = vperm.xlu1 %1626, %v753_v8  }
 0x342   : > { %1628 = vset.pattern.permute.xlu1 %v1829_v12 }
 0x343   : > { %988 = vperm.xlu1 %1628, %v2109_v9  }
 0x347   : > { %1629 = vset.pattern.permute.xlu1 %v1831_v14 }
 0x348   : > { %997 = vperm.xlu1 %1629, %v2109_v9  }
 0x34c   : > { %1632 = vset.pattern.permute.xlu1 %v1827_v6 }
 0x34d   : > { %974 = vperm.xlu1 %1632, %v2115_v17  }
 0x351   : > { %1633 = vset.pattern.permute.xlu1 %v1828_v11 }
 0x352   : > { %983 = vperm.xlu1 %1633, %v2115_v17  }
 0x356   : > { %1634 = vset.pattern.permute.xlu1 %v1826_v5  ;;  %v626_v5 = vrot.slane %v617_v4, %v625_v3 }
 0x357   : > { %965 = vperm.xlu1 %1634, %v2115_v17  }
 0x358   : > { %v634_v10 = vcombine.high %v626_v5, %v626_v5 }
 0x35b   : > { %1635 = vset.pattern.permute.xlu1 %v1831_v14  ;;  %v656_v14 = vrot.slane %v634_v10, %v625_v3 }
 0x35c   : > { %1001 = vperm.xlu1 %1635, %v2115_v17  }
 0x35d   : > { %v666_v32 = vcombine.high %v656_v14, %v656_v14 }
 0x360   : > { %1636 = vset.pattern.permute.xlu1 %v1830_v13 }
 0x361   : > { %1010 = vperm.xlu1 %1636, %v2115_v17  }
 0x365   : > { %1638 = vset.pattern.permute.xlu1 %v1832_v19  ;;  %v676_v19 = vrot.slane %v656_v14, %v2078_v18 }
 0x366   : > { %1019 = vperm.xlu1 %1638, %v2115_v17  }
 0x36a   : > { %1639 = vset.pattern.permute.xlu1 %v1833_v22 }
 0x36b   : > { %1024 = vperm.xlu1 %1639, %v2109_v9  }
 0x379   : > { %v827_v63 = vpop.permute.xlu0 %826 }
 0x37d   : > { %v812_v27 = vpop.permute.xlu1 %811  ;;  %v2198_v6 = vpop.permute.xlu0 %970 }
 0x37e   : > { %v819_v28 = vmul.f32 %v2134_v26, %v812_v27  ;;  %v619_v27 = vcombine.high %v617_v4, %v617_v4 }
 0x380   : > { %821 = vrot.lane.b32.xlu0 %v819_v28, %s1825_s11  ;;  %v633_v34 = vrot.slane %v619_v27, %v625_v3 }
 0x382   : > { %v831_v30 = vpop.permute.xlu1 %830  ;;  %v2202_v11 = vpop.permute.xlu0 %845  ;;  %v635_v41 = vcombine.high %v633_v34, %v633_v34 }
 0x383   : > { %v838_v31 = vmul.f32 %v2140_v29, %v831_v30  ;;  %v710_v30 = vmul.f32 %v676_v19, %v2210_v15  ;;  %v837_v19 = vmul.f32 %v2140_v29, %v827_v63  ;;  %v856_v29 = vmul.f32 %v2146_v33, %v2202_v11 }
 0x385   : > { %840 = vrot.lane.b32.xlu0 %v838_v31, %s1825_s11 }
 0x386   : > { %v2212_v2 = vpop.permute.xlu0 %979 }
 0x387   : > { %v850_v35 = vpop.permute.xlu1 %849 }
 0x388   : > { %v857_v36 = vmul.f32 %v2146_v33, %v850_v35  ;;  %v719_v35 = vmul.f32 1.442695, %v710_v30 }
 0x38a   : > { %859 = vrot.lane.b32.xlu0 %v857_v36, %s1825_s11 }
 0x38b   : > { %v961_v23 = vpop.permute.xlu0 %960 }
 0x38c   : > { %v869_v37 = vpop.permute.xlu1 %868 }
 0x38d   : > { %v876_v39 = vmul.f32 %v2152_v20, %v869_v37 }
 0x38f   : > { %878 = vrot.lane.b32.xlu0 %v876_v39, %s1825_s11  ;;  %v684_v39 = vrot.slane %v666_v32, %v2078_v18 }
 0x390   : > { %v2222_v36 = vpop.permute.xlu0 %1006 }
 0x391   : > { %v888_v40 = vpop.permute.xlu1 %887 }
 0x392   : > { %v895_v42 = vmul.f32 %v2157_v24, %v888_v40  ;;  %v649_v40 = vrot.slane %v633_v34, %v625_v3 }
 0x394   : > { %897 = vrot.lane.b32.xlu0 %v895_v42, %s1825_s11 }
 0x395   : > { %v865_v44 = vpop.permute.xlu0 %864 }
 0x396   : > { %v907_v16 = vpop.permute.xlu1 %906  ;;  %v875_v33 = vmul.f32 %v2152_v20, %v865_v44 }
 0x397   : > { %v914_v45 = vmul.f32 %v2162_v43, %v907_v16  ;;  %v712_v16 = vmul.f32 %v684_v39, %v2210_v15 }
 0x398   : > { %1015 = vperm.xlu0 %1637, %v2109_v9   ;;  %v642_v9 = vrot.slane %v626_v5, %v625_v3 }
 0x399   : > { %916 = vrot.lane.b32.xlu1 %v914_v45, %s1825_s11  ;;  %v688_v45 = vrot.slane %v649_v40, %v2078_v18  ;;  %v723_v51 = vmul.f32 1.442695, %v712_v16 }
 0x39a   : > { %v672_v13 = vrot.slane %v642_v9, %v2078_v18 }
 0x39b   : > { %v926_v50 = vpop.permute.xlu1 %925 }
 0x39c   : > { %v933_v52 = vmul.f32 %v2168_v48, %v926_v50  ;;  %1640 = vset.pattern.permute.xlu0 %v1833_v22  ;;  %v664_v22 = vcombine.high %v642_v9, %v642_v9  ;;  %v663_v50 = vrot.slane %v635_v41, %v625_v3 }
 0x39d   : > { %1028 = vperm.xlu0 %1640, %v2115_v17   ;;  %v709_v17 = vmul.f32 %v672_v13, %v2210_v15 }
 0x39e   : > { %935 = vrot.lane.b32.xlu1 %v933_v52, %s1825_s11  ;;  %v680_v31 = vrot.slane %v664_v22, %v2078_v18  ;;  %v2228_v52 = vpop.permute.xlu0 %992 }
 0x39f   : > { %v717_v25 = vmul.f32 1.442695, %v709_v17  ;;  %v667_v17 = vcombine.high %v663_v50, %v663_v50 }
 0x3a0   : > { %v945_v55 = vpop.permute.xlu1 %944  ;;  %v711_v37 = vmul.f32 %v680_v31, %v2210_v15 }
 0x3a1   : > { %v952_v56 = vmul.f32 %v2178_v53, %v945_v55  ;;  %1197 = vrot.lane.b32.xlu0 %v1186_v54, %s1825_s11  ;;  %1653 = vpow2.f32 %v717_v25  ;;  %v713_v55 = vmul.f32 %v688_v45, %v2210_v15 }
 0x3a2   : > { %1655 = vpow2.f32 %v719_v35  ;;  %v721_v42 = vmul.f32 1.442695, %v711_v37  ;;  %v700_v37 = vrot.slane %v667_v17, %v2078_v18 }
 0x3a3   : > { %954 = vrot.lane.b32.xlu1 %v952_v56, %s1825_s11  ;;  %v692_v56 = vrot.slane %v663_v50, %v2078_v18  ;;  %v725_v4 = vmul.f32 1.442695, %v713_v55 }
 0x3a4   : > { %1657 = vpow2.f32 %v721_v42 }
 0x3a5   : > { %v807_v58 = vpop.permute.xlu1 %806  ;;  %1659 = vpow2.f32 %v723_v51  ;;  %v714_v3 = vmul.f32 %v692_v56, %v2210_v15 }
 0x3a6   : > { %1661 = vpow2.f32 %v725_v4 }
 0x3a7   : > { %1193 = vrot.lane.b32.xlu1 %v1184_v21, %s1825_s11  ;;  %v665_v21 = vcombine.high %v649_v40, %v649_v40  ;;  %v727_v27 = vmul.f32 1.442695, %v714_v3 }
 0x3a9   : > { %v696_v13 = vrot.slane %v665_v21, %v2078_v18  ;;  %1663 = vpow2.f32 %v727_v27 }
 0x3aa   : > { %v2190_v61 = vpop.permute.xlu1 %883 }
 0x3ab   : > { %1195 = vrot.lane.b32.xlu1 %v1185_v57, %s1825_s11  ;;  %v818_v57 = vmul.f32 %v2134_v26, %v807_v58  ;;  %v715_v32 = vmul.f32 %v696_v13, %v2210_v15  ;;  %v894_v44 = vmul.f32 %v2157_v24, %v2190_v61 }
 0x3ad   : > { %v729_v16 = vmul.f32 1.442695, %v715_v32 }
 0x3ae   : > { %v1654_v54 = vpop.eup %1653 }
 0x3af   : > { %1191 = vrot.lane.b32.xlu1 %v2171_v49, %s1825_s11  ;;  %v2192_v1 = vpop.permute.xlu1 %902  ;;  %v1032_v60 = vmul.f32 0.0, %v1654_v54  ;;  %v1656_v10 = vpop.eup %1655  ;;  %v716_v54 = vmul.f32 %v700_v37, %v2210_v15  ;;  %1665 = vpow2.f32 %v729_v16 }
 0x3b0   : > { %v913_v24 = vmul.f32 %v2162_v43, %v2192_v1 }
 0x3b1   : > { %v1658_v35 = vpop.eup %1657  ;;  %v731_v4 = vmul.f32 1.442695, %v716_v54 }
 0x3b2   : > { %v1660_v56 = vpop.eup %1659 }
 0x3b3   : > { %v1662_v13 = vpop.eup %1661  ;;  %1667 = vpow2.f32 %v731_v4  ;;  %v1188_v4 = vrot.slane %v2171_v49, 5 }
 0x3b4   : > { %v2200_v8 = vpop.permute.xlu1 %921 }
 0x3b5   : > { %v932_v43 = vmul.f32 %v2168_v48, %v2200_v8 }
 0x3b9   : > { %v2204_v12 = vpop.permute.xlu1 %940 }
 0x3ba   : > { %v951_v48 = vmul.f32 %v2178_v53, %v2204_v12  ;;  %v1230_v53 = vld [vmem:[%s2402_s8 + $0x38] sm:$0xff] }
 0x3bb   : > { %1514 = vmatpush3.msra.mxu0 %v1230_v53 }
 0x3bc   : > { %1515 = vmatprep.subr.mxu0 %v1822_v0 }
 0x3be   : > { %v2214_v7 = vpop.permute.xlu1 %988 }
 0x3bf   : > { %v995_v20 = vsel %vm512_vm5, %v2214_v7, %v2228_v52 }
 0x3c3   : > { %v2218_v28 = vpop.permute.xlu1 %997 }
 0x3c8   : > { %v975_v38 = vpop.permute.xlu1 %974 }
 0x3cd   : > { %v984_v47 = vpop.permute.xlu1 %983 }
 0x3d2   : > { %v966_v59 = vpop.permute.xlu1 %965 }
 0x3d3   : > { %v968_v14 = vsel %vm512_vm5, %v961_v23, %v966_v59  ;;  %v977_v23 = vsel %vm512_vm5, %v2198_v6, %v975_v38  ;;  %v986_v6 = vsel %vm512_vm5, %v2212_v2, %v984_v47 }
 0x3d7   : > { %v1002_v58 = vpop.permute.xlu1 %1001 }
 0x3d8   : > { %v1004_v32 = vsel %vm512_vm5, %v2218_v28, %v1002_v58 }
 0x3dc   : > { %v1011_v45 = vpop.permute.xlu1 %1010 }
 0x3dd   : > { %v1013_v58 = vsel %vm512_vm5, %v2222_v36, %v1011_v45 }
 0x3e1   : > { %v1020_v59 = vpop.permute.xlu1 %1019 }
 0x3f2   : > { %v822_v62 = vpop.permute.xlu0 %821 }
 0x3f3   : > { %v824_v5 = vsel %vm512_vm5, %v818_v57, %v822_v62 }
 0x3f4   : > { %v1033_v9 = vadd.f32 %v1032_v60, %v824_v5 }
 0x3f6   : > { %v1048_v22 = vmul.f32 %v1033_v9, %v968_v14  ;;  %v1034_v26 = vmul.f32 %v1656_v10, %v1033_v9 }
 0x3f7   : > { %v841_v25 = vpop.permute.xlu0 %840 }
 0x3f8   : > { %v1056_v30 = vrot.slane %v1048_v22, 4  ;;  %v843_v31 = vsel %vm512_vm5, %v837_v19, %v841_v25 }
 0x3f9   : > { %v1035_v34 = vadd.f32 %v1034_v26, %v843_v31  ;;  %v1025_v26 = vpop.permute.xlu1 %1024  ;;  %v1664_v31 = vpop.eup %1663 }
 0x3fa   : > { %v1057_v39 = vadd.f32 %v1056_v30, %v1048_v22  ;;  %v1666_v28 = vpop.eup %1665 }
 0x3fb   : > { %v1049_v63 = vmul.f32 %v1035_v34, %v977_v23  ;;  %v1036_v40 = vmul.f32 %v1658_v35, %v1035_v34  ;;  %v1668_v36 = vpop.eup %1667 }
 0x3fc   : > { %v860_v41 = vpop.permute.xlu0 %859  ;;  %v1058_v42 = vrot.slane %v1057_v39, 2 }
 0x3fd   : > { %v1062_v50 = vrot.slane %v1049_v63, 4  ;;  %v862_v51 = vsel %vm512_vm5, %v856_v29, %v860_v41 }
 0x3fe   : > { %v1037_v18 = vadd.f32 %v1036_v40, %v862_v51  ;;  %v1059_v55 = vadd.f32 %v1058_v42, %v1057_v39 }
 0x3ff   : > { %v1063_v38 = vadd.f32 %v1062_v50, %v1049_v63 }
 0x400   : > { %v1050_v11 = vmul.f32 %v1037_v18, %v986_v6  ;;  %v1038_v21 = vmul.f32 %v1660_v56, %v1037_v18  ;;  %v1060_v57 = vrot.slane %v1059_v55, 1 }
 0x401   : > { %v879_v60 = vpop.permute.xlu0 %878  ;;  %v1064_v62 = vrot.slane %v1063_v38, 2 }
 0x402   : > { %v1068_v5 = vrot.slane %v1050_v11, 4  ;;  %v881_v15 = vsel %vm512_vm5, %v875_v33, %v879_v60  ;;  %v2251_v3 = vadd.f32 %v1060_v57, %v1059_v55 }
 0x403   : > { %v1039_v9 = vadd.f32 %v1038_v21, %v881_v15  ;;  %v1065_v10 = vadd.f32 %v1064_v62, %v1063_v38 }
 0x404   : > { %v1069_v2 = vadd.f32 %v1068_v5, %v1050_v11  ;;  %1112 = vrot.lane.b32.xlu1 %v2251_v3, %s1825_s11 }
 0x405   : > { %v1051_v47 = vmul.f32 %v1039_v9, %v995_v20  ;;  %v1040_v14 = vmul.f32 %v1662_v13, %v1039_v9  ;;  %v1066_v17 = vrot.slane %v1065_v10, 1 }
 0x406   : > { %v898_v19 = vpop.permute.xlu0 %897  ;;  %v1070_v22 = vrot.slane %v1069_v2, 2 }
 0x407   : > { %v1074_v25 = vrot.slane %v1051_v47, 4  ;;  %v900_v27 = vsel %vm512_vm5, %v894_v44, %v898_v19  ;;  %v2261_v30 = vadd.f32 %v1066_v17, %v1065_v10  ;;  %v1229_v17 = vld [vmem:[%s2402_s8 + $0x30] sm:$0xff] }
 0x408   : > { %v1041_v7 = vadd.f32 %v1040_v14, %v900_v27  ;;  %v1071_v52 = vadd.f32 %v1070_v22, %v1069_v2  ;;  %v1187_v14 = vrot.slane %v2171_v49, 4  ;;  %1516 = vmatpush3.msra.mxu0 %v1229_v17  ;;  %v1227_v27 = vld [vmem:[%s2402_s8 + $0x20] sm:$0xff] }
 0x409   : > { %v1075_v34 = vadd.f32 %v1074_v25, %v1051_v47  ;;  %1114 = vrot.lane.b32.xlu1 %v2261_v30, %s1825_s11  ;;  %1517 = vmatprep.subr.mxu0 %v1822_v0 }
 0x40a   : > { %v1052_v61 = vmul.f32 %v1041_v7, %v1004_v32  ;;  %v1042_v35 = vmul.f32 %v1664_v31, %v1041_v7  ;;  %v1072_v37 = vrot.slane %v1071_v52, 1  ;;  %v1189_v31 = vrot.slane %v2171_v49, 6  ;;  %v1226_v32 = vld [vmem:[%s2402_s8 + $0x18] sm:$0xff] }
 0x40b   : > { %v917_v23 = vpop.permute.xlu1 %916  ;;  %v1076_v39 = vrot.slane %v1075_v34, 2 }
 0x40c   : > { %v1080_v29 = vrot.slane %v1052_v61, 4  ;;  %v919_v63 = vsel %vm512_vm5, %v913_v24, %v917_v23  ;;  %v2270_v40 = vadd.f32 %v1072_v37, %v1071_v52  ;;  %v1225_v37 = vld [vmem:[%s2402_s8 + $0x10] sm:$0xff]  ;;  %v1224_v23 = vld [vmem:[%s2402_s8 + $0x8] sm:$0xff] }
 0x40d   : > { %v1043_v41 = vadd.f32 %v1042_v35, %v919_v63  ;;  %v1077_v42 = vadd.f32 %v1076_v39, %v1075_v34 }
 0x40e   : > { %v1081_v16 = vadd.f32 %v1080_v29, %v1052_v61  ;;  %1116 = vrot.lane.b32.xlu0 %v2270_v40, %s1825_s11  ;;  %v1223_v29 = vld [vmem:[%s2402_s8] sm:$0xff] }
 0x40f   : > { %v1053_v1 = vmul.f32 %v1043_v41, %v1013_v58  ;;  %v1044_v50 = vmul.f32 %v1666_v28, %v1043_v41  ;;  %v1078_v51 = vrot.slane %v1077_v42, 1  ;;  %v1190_v41 = vrot.slane %v2171_v49, 7 }
 0x410   : > { %v936_v54 = vpop.permute.xlu1 %935  ;;  %v1082_v18 = vrot.slane %v1081_v16, 2 }
 0x411   : > { %v1086_v55 = vrot.slane %v1053_v1, 4  ;;  %v938_v56 = vsel %vm512_vm5, %v932_v43, %v936_v54  ;;  %v2279_v6 = vadd.f32 %v1078_v51, %v1077_v42  ;;  %v1453_v51 = vld [vmem:[%s2401_s7] ss:$0 sm:$0xff] }
 0x412   : > { %v1045_v38 = vadd.f32 %v1044_v50, %v938_v56  ;;  %v1083_v33 = vadd.f32 %v1082_v18, %v1081_v16 }
 0x413   : > { %v1087_v45 = vadd.f32 %v1086_v55, %v1053_v1  ;;  %v1016_v11 = vpop.permute.xlu0 %1015  ;;  %1118 = vrot.lane.b32.xlu0 %v2279_v6, %s1825_s11 }
 0x414   : > { %v1022_v8 = vsel %vm512_vm5, %v1016_v11, %v1020_v59  ;;  %v1046_v21 = vmul.f32 %v1668_v36, %v1045_v38  ;;  %v1084_v57 = vrot.slane %v1083_v33, 1 }
 0x415   : > { %v1054_v60 = vmul.f32 %v1045_v38, %v1022_v8  ;;  %v955_v62 = vpop.permute.xlu1 %954  ;;  %v1088_v5 = vrot.slane %v1087_v45, 2 }
 0x416   : > { %v957_v15 = vsel %vm512_vm5, %v951_v48, %v955_v62  ;;  %v2288_v9 = vadd.f32 %v1084_v57, %v1083_v33 }
 0x417   : > { %v1092_v10 = vrot.slane %v1054_v60, 4  ;;  %v1047_v13 = vadd.f32 %v1046_v21, %v957_v15  ;;  %1201 = vrot.lane.b32.xlu0 %v1188_v4, %s1825_s11  ;;  %v1089_v20 = vadd.f32 %v1088_v5, %v1087_v45 }
 0x418   : > { %v1029_v2 = vpop.permute.xlu0 %1028  ;;  %1120 = vrot.lane.b32.xlu1 %v2288_v9, %s1825_s11 }
 0x419   : > { %v1093_v12 = vadd.f32 %v1092_v10, %v1054_v60  ;;  %v1031_v59 = vsel %vm512_vm5, %v1025_v26, %v1029_v2  ;;  %v1090_v44 = vrot.slane %v1089_v20, 1  ;;  %v1228_v26 = vld [vmem:[%s2402_s8 + $0x28] sm:$0xff]  ;;  %v1194_v42 = vpop.permute.xlu1 %1193 }
 0x41a   : > { %v1055_v47 = vmul.f32 %v1047_v13, %v1031_v59  ;;  %1518 = vmatpush3.msra.mxu0 %v1228_v26 }
 0x41b   : > { %v1094_v19 = vrot.slane %v1093_v12, 2  ;;  %v1091_v22 = vadd.f32 %v1090_v44, %v1089_v20  ;;  %1519 = vmatprep.subr.mxu0 %v1822_v0 }
 0x41c   : > { %v1098_v25 = vrot.slane %v1055_v47, 4  ;;  %1199 = vrot.lane.b32.xlu1 %v1187_v14, %s1825_s11  ;;  %1520 = vmatpush3.msra.mxu0 %v1227_v27  ;;  %v1198_v58 = vpop.permute.xlu0 %1197 }
 0x41d   : > { %1122 = vrot.lane.b32.xlu0 %v1091_v22, %s1825_s11  ;;  %v1095_v7 = vadd.f32 %v1094_v19, %v1093_v12  ;;  %1521 = vmatprep.subr.mxu0 %v1822_v0  ;;  %v1196_v28 = vpop.permute.xlu1 %1195 }
 0x41e   : > { %v1099_v52 = vadd.f32 %v1098_v25, %v1055_v47  ;;  %1522 = vmatpush3.msra.mxu0 %v1226_v32 }
 0x41f   : > { %v1096_v34 = vrot.slane %v1095_v7, 1  ;;  %1523 = vmatprep.subr.mxu0 %v1822_v0 }
 0x420   : > { %v1100_v24 = vrot.slane %v1099_v52, 2  ;;  %1203 = vrot.lane.b32.xlu1 %v1189_v31, %s1825_s11  ;;  %1524 = vmatpush3.msra.mxu0 %v1225_v37 }
 0x421   : > { %v1097_v61 = vadd.f32 %v1096_v34, %v1095_v7  ;;  %1525 = vmatprep.subr.mxu0 %v1822_v0  ;;  %v1192_v16 = vpop.permute.xlu1 %1191 }
 0x422   : > { %v1101_v35 = vadd.f32 %v1100_v24, %v1099_v52  ;;  %1526 = vmatpush3.msra.mxu0 %v1224_v23 }
 0x423   : > { %1124 = vrot.lane.b32.xlu0 %v1097_v61, %s1825_s11  ;;  %1527 = vmatprep.subr.mxu0 %v1822_v0  ;;  %v1151_v0 = vmul.f32 %v1453_v51, %v2098_v46 }
 0x424   : > { %v1102_v39 = vrot.slane %v1101_v35, 1  ;;  %1528 = vmatpush3.msra.mxu0 %v1223_v29 }
 0x425   : > { %v1153_v38 = vrot.slane %v1151_v0, 1  ;;  %v1154_v45 = vrot.slane %v1151_v0, 2  ;;  %v1155_v8 = vrot.slane %v1151_v0, 3  ;;  %v1156_v60 = vrot.slane %v1151_v0, 4 }
 0x426   : > { %v1103_v63 = vadd.f32 %v1102_v39, %v1101_v35  ;;  %v1159_v19 = vrot.slane %v1151_v0, 7 }
 0x428   : > { %1126 = vrot.lane.b32.xlu0 %v1103_v63, %s1825_s11 }
 0x42c   : > { %1205 = vrot.lane.b32.xlu0 %v1190_v41, %s1825_s11  ;;  %s1457_s11 = sshll.u32 %s1907_s13, 7  ;;  %s1835_s13 = smov [#allocation8]  }
 0x42d   : > { %s2350_s25 = scalar_lea.hbm %s2403_s9, %s1457_s11  ;;  %s1753_s5 = sshll.u32 %s1835_s13, 4  ;;  %s1754_s5 = int_to_ptr.vmem [resolvable:$false] %s1753_s5 }
 0x42e   : > { %s1755_s17 = scalar_lea.vmem %s1754_s5, 256  ;;  %p1756_p4 = scmp.lt.s32.totalorder %s2352_s29, %s1754_s5 }
 0x42f   : > { %p1757_p6 = scmp.lt.s32.totalorder %s1755_s17, %s1749_s15 }
 0x431   : > { %p1758_p9 = por %p1757_p6, %p1756_p4 }
 0x433   : > { %p1759_p3 = pnand %p1758_p9, %p1752_p2 }
 0x476   : > { %v1113_v1 = vpop.permute.xlu1 %1112 }
 0x477   : > { %v1136_v46 = vadd.f32 %v1113_v1, %v2251_v3 }
 0x479   : > { %v1168_v2 = vadd.f32 %v1151_v0, %v1136_v46 }
 0x47b   : > { %v1115_v54 = vpop.permute.xlu1 %1114 }
 0x47c   : > { %v1137_v55 = vadd.f32 %v1115_v54, %v2261_v30  ;;  %v1157_v30 = vrot.slane %v1151_v0, 5 }
 0x47e   : > { %v1169_v48 = vadd.f32 %v1153_v38, %v1137_v55 }
 0x480   : > { %v1117_v43 = vpop.permute.xlu0 %1116  ;;  %v1216_v15 = vmul.f32 %v1194_v42, %v1169_v48 }
 0x481   : > { %v1138_v56 = vadd.f32 %v1117_v43, %v2270_v40 }
 0x482   : > { %v1239_v59 = vrot.slane %v1216_v15, 7 }
 0x483   : > { %v1170_v57 = vadd.f32 %v1154_v45, %v1138_v56 }
 0x485   : > { %v1119_v50 = vpop.permute.xlu0 %1118  ;;  %v1217_v13 = vmul.f32 %v1196_v28, %v1170_v57 }
 0x486   : > { %v1139_v33 = vadd.f32 %v1119_v50, %v2279_v6  ;;  %v1158_v6 = vrot.slane %v1151_v0, 6 }
 0x487   : > { %v1242_v14 = vrot.slane %v1217_v13, 6 }
 0x488   : > { %v1171_v62 = vadd.f32 %v1155_v8, %v1139_v33 }
 0x489   : > { %v1202_v18 = vpop.permute.xlu0 %1201 }
 0x48a   : > { %v1121_v49 = vpop.permute.xlu1 %1120  ;;  %v1218_v53 = vmul.f32 %v1198_v58, %v1171_v62 }
 0x48b   : > { %v1140_v11 = vadd.f32 %v1121_v49, %v2288_v9 }
 0x48c   : > { %v1245_v25 = vrot.slane %v1218_v53, 5 }
 0x48d   : > { %v1172_v5 = vadd.f32 %v1156_v60, %v1140_v11 }
 0x48e   : > { %v1200_v4 = vpop.permute.xlu1 %1199 }
 0x48f   : > { %v1123_v36 = vpop.permute.xlu0 %1122  ;;  %v1219_v9 = vmul.f32 %v1200_v4, %v1172_v5 }
 0x490   : > { %v1141_v21 = vadd.f32 %v1123_v36, %v1091_v22  ;;  %v1215_v22 = vmul.f32 %v1192_v16, %v1168_v2 }
 0x491   : > { %v1248_v27 = vrot.slane %v1219_v9, 4 }
 0x492   : > { %v1173_v40 = vadd.f32 %v1157_v30, %v1141_v21  ;;  %v1204_v47 = vpop.permute.xlu1 %1203  ;;  %v1241_v7 = vsel %vm1240_vm8, %v1239_v59, %v1215_v22 }
 0x493   : > { %v1244_v32 = vsel %vm1243_vm9, %v1242_v14, %v1241_v7 }
 0x494   : > { %v1220_v44 = vmul.f32 %v1202_v18, %v1173_v40 }
 0x495   : > { %v1125_v10 = vpop.permute.xlu0 %1124 }
 0x496   : > { %v1142_v20 = vadd.f32 %v1125_v10, %v1097_v61  ;;  %v1251_v52 = vrot.slane %v1220_v44, 3  ;;  %v1247_v61 = vsel %vm1246_vm10, %v1245_v25, %v1244_v32 }
 0x497   : > { %v1250_v37 = vsel %vm1249_vm11, %v1248_v27, %v1247_v61 }
 0x498   : > { %v1174_v12 = vadd.f32 %v1158_v6, %v1142_v20  ;;  %v1253_v23 = vsel %vm1252_vm12, %v1251_v52, %v1250_v37 }
 0x49a   : > { %v1221_v3 = vmul.f32 %v1204_v47, %v1174_v12  ;;  %v1127_v17 = vpop.permute.xlu0 %1126 }
 0x49b   : > { %v1143_v26 = vadd.f32 %v1127_v17, %v1103_v63 }
 0x49c   : > { %v1254_v34 = vrot.slane %v1221_v3, 2 }
 0x49d   : > { %v1175_v31 = vadd.f32 %v1159_v19, %v1143_v26 }
 0x49e   : > { %v1206_v24 = vpop.permute.xlu0 %1205  ;;  %v1256_v29 = vsel %vm1255_vm13, %v1254_v34, %v1253_v23 }
 0x49f   : > { %v1222_v35 = vmul.f32 %v1206_v24, %v1175_v31 }
 0x4a1   : > { %v1257_v39 = vrot.slane %v1222_v35, 1 }
 0x4a3   : > { %v1259_v63 = vsel %vm1258_vm14, %v1257_v39, %v1256_v29 }
 0x4a4   : > { %1530 = vmatmul.mubr.msk.f32.vlgmr.msra.gmra.mxu0 %vm512_vm5, %v1259_v63 }
 0x564   : > { %v1328_v41 = vpop.f32.mrf.mxu0 }
 0x565   : > { %1332 = vst.msk [vmem:[%s372_s28] sm:$0xff] %vm378_vm1, %v1328_v41 }
 0x566   : > { %v1531_v42 = vpop.f32.mrf.mxu0 }
 0x567   : > { %1762 = shalt.err (!%p1759_p3)
}
 0x568   : > { %s1763_s21 = scalar_lea.hbm %s2350_s25, 128  ;;  %s1767_s18 = scalar_lea.hbm %s2403_s9, 256 }
 0x569   : > { %p1764_p7 = scmp.ne.s32.totalorder %s2350_s25, %s1763_s21  ;;  %p1768_p12 = scmp.lt.s32.totalorder %s2350_s25, %s2403_s9 }
 0x56a   : > { %p1769_p8 = scmp.lt.s32.totalorder %s1767_s18, %s1763_s21 }
 0x56b   : > { %p1765_p13 = pnand %p1764_p7, %p2426_p5 }
 0x56c   : > { %p1770_p11 = por %p1769_p8, %p1768_p12 }
 0x56d   : > { %p1766_p0 = pneg %p1765_p13 }
 0x56f   : > { %p1771_p10 = pnand %p1770_p11, %p1766_p0 }
 0x571   : > { %1774 = shalt.err (!%p1771_p10)
}
 0x572   : > { %1542 = dma.vmem_to_hbm [thread:$0]  (%p2426_p5), %s2352_s29, 128, %s2350_s25, %s1334_s20  }
 0x573 PF: > { %s1359_s11 = sand.u32 1, %s1805_s30   ;;  %p2427_p1 = scmp.ne.s32.totalorder %s2413_s16, 0 }
 0x574   : > { %p2428_p2 = scmp.ge.s32.totalorder %s1817_s12, 2  ;;  %s1360_s28 = scalar_lea.sflag [#allocation4], %s1359_s11 }
 0x576   : > { %p1556_p4 = pnand %p2428_p2, %p2427_p1 }
 0x578   : > { %p1557_p6 = pneg %p1556_p4 }
 0x57a   : > { %1800 = dma.done.wait (%p1557_p6), %s1360_s28, 128  }
 0x57b   : > { %1802 = vsyncadd (%p1557_p6), %s1360_s28, 4294967168  ;;  %s2429_s26 = sld [smem:[#allocation12_spill]]  ;;  %p23_p9 = scmp.ge.s32.totalorder %s1940_s23, 4  }
 0x57c   : > { %s2430_s11 = sld [smem:[#allocation13_spill]]  ;;  %s2431_s30 = smov %s1809_s10 }
 0x57d   : > { %s2433_s12 = smov %s1940_s23  ;;  %25 = sbr.rel (!%p23_p9) target bundleno = 9 (0x9), region = 109 }
 0x581   : > { %s2432_s10 = smov %s2429_s26 }
 0x582   :  { %1365 = vsyncpa [#allocation3], 1 }
 0x583   :  { %1367 = vsyncpa [#allocation3 + $0x1], 1 }
 0x584   :  { %1368 = vsyncpa [#allocation6], 1 }
 0x585   :  { %1369 = vsyncpa [#allocation4], 1 }
 0x586   :  { %1371 = vsyncpa [#allocation4 + $0x1], 1 }

</bundles_post_ra>
